<compile_context>
chip_gen: v7x
topology: tpu7x:2x2x1
jax: 0.10.0
libtpu: 0.0.40
codegen_flags: <defaults>
</compile_context>

<pallas_src>
import functools

import jax
import jax.numpy as jnp
from jax import lax
from jax.experimental import pallas as pl
from jax.experimental.pallas import tpu as pltpu


# ----------------------------- fused BiGRU layer kernel -----------------------------

def _bigru_layer_kernel(gi_ref, whh_ref, bhn_ref, out_ref, *, seq_len, batch, hidden):
    """One bidirectional GRU layer, both directions fused, single recurrent dot per step.

    gi:  (L, B, 6H) hoisted input projection, lanes [r_f|r_b|z_f|z_b|n_f|n_b];
         the backward halves are already time-reversed in the wrapper.
    whh: (2H, 6H) per-gate block-diagonal recurrent weights, gate blocks concatenated.
    bhn: (1, 2H)  hidden bias of the n gate (kept inside the r* term, PyTorch GRU).
    out: (L, B, 2H) time-major fused hidden states (fwd at time s in lanes [:H],
         bwd at reversed-time index s in lanes [H:]); realigned by XLA in the wrapper.
    """
    H, B, L = hidden, batch, seq_len
    H2 = 2 * H

    # Loop-invariant loads / broadcasts hoisted off the serial chain.
    whh = whh_ref[...]                                  # (2H, 6H)
    bhn = jnp.broadcast_to(bhn_ref[...], (B, H2))

    def step(s, h):
        gh = jnp.dot(h, whh, preferred_element_type=jnp.float32)   # one MXU push per step
        gi = gi_ref[s]                                              # one (B, 6H) vld per step
        r = jax.nn.sigmoid(gi[:, 0:H2] + gh[:, 0:H2])
        z = jax.nn.sigmoid(gi[:, H2:2 * H2] + gh[:, H2:2 * H2])
        n = jnp.tanh(gi[:, 2 * H2:3 * H2] + r * (gh[:, 2 * H2:3 * H2] + bhn))
        h_new = (1.0 - z) * n + z * h
        out_ref[s] = h_new                                          # single dense store
        return h_new

    # Full unroll only for short toy sequences; modest unroll at realistic L (spill control).
    unroll = True if L <= 16 else 8
    lax.fori_loop(0, L, step, jnp.zeros((B, H2), jnp.float32), unroll=unroll)


def bigru_layer(gi, layer_p, batch, seq_len, hidden):
    vmem = pl.BlockSpec(memory_space=pltpu.MemorySpace.VMEM)
    return pl.pallas_call(
        functools.partial(_bigru_layer_kernel, seq_len=seq_len, batch=batch, hidden=hidden),
        out_shape=jax.ShapeDtypeStruct((seq_len, batch, 2 * hidden), jnp.float32),
        in_specs=[vmem] * 3,
        out_specs=vmem,
        compiler_params=pltpu.CompilerParams(vmem_limit_bytes=32 * 1024 * 1024),
    )(gi, layer_p['whh_all'], layer_p['bhh_n'])


# ----------------- fused concept attention + conv + classifier head -----------------

def _concept_head_kernel(*refs, batch, seq_len, hidden, word_dim, filters):
    nf = len(filters)
    n_in = 8 + 2 * nf
    gru_ref, ctab_ref, wc_ref, bc_ref = refs[0:4]
    conv_refs = refs[4:4 + 2 * nf]
    fc1w_ref, fc1b_ref, fc2w_ref, fc2b_ref = refs[4 + 2 * nf:n_in]
    out_ref = refs[n_in]
    feats_ref = refs[n_in + 1]                          # (N_pad, S) zero-padded scratch

    B, L, H, D = batch, seq_len, hidden, word_dim
    N = B * L
    H2 = 2 * H
    S = H2 + D                                          # per-word feature width (== 2D)

    gru = gru_ref[...]                                                  # (N, 2H)

    # fc1_concept + tanh -> per-word context (torch: tanh(fc1_concept(gru_out)))
    context = jnp.tanh(
        jnp.dot(gru, wc_ref[...], preferred_element_type=jnp.float32) + bc_ref[...])   # (N, D)

    # Concept attention: softmax over the K candidate concepts of each word.
    ctab = ctab_ref[...]                                                # (N, K, D)
    scores = jnp.sum(ctab * context[:, None, :], axis=2)                # (N, K)
    e = jnp.exp(scores - jnp.max(scores, axis=1, keepdims=True))
    attn = e * pl.reciprocal(jnp.sum(e, axis=1, keepdims=True), approx=True)
    concepts = jnp.sum(attn[:, :, None] * ctab, axis=1)                 # (N, D)

    # Stage per-word features [gru | concept] once in a zero-padded scratch:
    # two half-stores (no lane concat); tail rows stay zero so row-offset taps are safe.
    feats_ref[0:N, 0:H2] = gru
    feats_ref[0:N, H2:S] = concepts
    pad_rows = feats_ref.shape[0] - N
    if pad_rows > 0:
        feats_ref[N:, :] = jnp.zeros((pad_rows, S), jnp.float32)

    row_pos = lax.broadcasted_iota(jnp.int32, (N, 1), 0) % L            # word position in sentence

    pooled_parts = []
    for i, fsz in enumerate(filters):
        w_ref = conv_refs[2 * i]                                        # (fsz*S, NF_i)
        # Per-tap accumulation: conv = sum_j feats[r+j] @ W[j*S:(j+1)*S]  (no im2col copies).
        acc = None
        for j in range(fsz):
            tap = feats_ref[j:j + N, :]                                 # (N, S) row-offset slice
            part = jnp.dot(tap, w_ref[j * S:(j + 1) * S, :],
                           preferred_element_type=jnp.float32)
            acc = part if acc is None else acc + part
        conv = jnp.maximum(acc + conv_refs[2 * i + 1][...], 0.0)        # bias + ReLU
        # Positions p > L - fsz (windows crossing sentence boundaries / padded tail) are
        # invalid; ReLU >= 0, so zeroing them leaves the per-sentence max unchanged.
        conv = jnp.where(row_pos <= (L - fsz), conv, 0.0)
        pooled_parts.append(jnp.max(conv.reshape(B, L, -1), axis=1))    # (B, NF_i)

    pooled_all = jnp.concatenate(pooled_parts, axis=1)                  # (B, sum NF)

    # fc1 -> tanh -> (dropout: identity) -> fc2 -> softmax, matching the torch order.
    h1 = jnp.tanh(
        jnp.dot(pooled_all, fc1w_ref[...], preferred_element_type=jnp.float32) + fc1b_ref[...])
    logits = jnp.dot(h1, fc2w_ref[...], preferred_element_type=jnp.float32) + fc2b_ref[...]
    ez = jnp.exp(logits - jnp.max(logits, axis=1, keepdims=True))
    out_ref[...] = ez / jnp.sum(ez, axis=1, keepdims=True)              # exact final softmax


def concept_conv_head(gru2d, ctab, pp, cfg, batch, seq_len):
    filters = tuple(cfg['filters'])
    N = batch * seq_len
    S = 2 * cfg['hidden'] + cfg['word_dim']
    fmax = max(filters)
    n_pad = ((N + fmax - 1 + 7) // 8) * 8               # sublane-rounded padded row count

    args = [gru2d, ctab, pp['wc'], pp['bc']]
    for i in range(len(filters)):
        args += [pp['conv_wT'][i], pp['conv_b'][i]]
    args += [pp['fc1_wT'], pp['fc1_b'], pp['fc2_wT'], pp['fc2_b']]

    vmem = pl.BlockSpec(memory_space=pltpu.MemorySpace.VMEM)
    return pl.pallas_call(
        functools.partial(_concept_head_kernel, batch=batch, seq_len=seq_len,
                          hidden=cfg['hidden'], word_dim=cfg['word_dim'], filters=filters),
        out_shape=jax.ShapeDtypeStruct((batch, cfg['n_classes']), jnp.float32),
        in_specs=[vmem] * len(args),
        out_specs=vmem,
        scratch_shapes=[pltpu.VMEM((n_pad, S), jnp.float32)],
        compiler_params=pltpu.CompilerParams(vmem_limit_bytes=32 * 1024 * 1024),
    )(*args)


# ------------------------------ parameter preparation --------------------------------

def prep_params(params, cfg):
    """One-time weight re-layout: transposes, fused (2H, 6H) W_hh, folded biases."""
    H, D = cfg['hidden'], cfg['word_dim']
    H2 = 2 * H

    def blockdiag(a, b):
        z = jnp.zeros((H, H), jnp.float32)
        return jnp.concatenate([jnp.concatenate([a, z], axis=1),
                                jnp.concatenate([z, b], axis=1)], axis=0)

    layers = []
    for p in params['gru_layers']:
        # Single fused recurrent weight: [r | z | n] gate blocks, each (2H, 2H) block-diag
        # over the (fwd, bwd) directions.  TODO(synk): at H >= 128 drop the zero blocks
        # (two H-wide dots per step) to halve serial-path MXU FLOPs.
        whh_all = jnp.concatenate(
            [blockdiag(p['whh_f'][0:H].T, p['whh_b'][0:H].T),
             blockdiag(p['whh_f'][H:H2].T, p['whh_b'][H:H2].T),
             blockdiag(p['whh_f'][H2:3 * H].T, p['whh_b'][H2:3 * H].T)], axis=1)   # (2H, 6H)
        layers.append(dict(
            wih_f=p['wih_f'].T,                                    # (Din, 3H)
            wih_b=p['wih_b'].T,
            # fold b_ih (all gates) + b_hh (r, z gates only) into the hoisted projection
            bi_f=p['bih_f'] + jnp.concatenate([p['bhh_f'][:H2], jnp.zeros((H,), jnp.float32)]),
            bi_b=p['bih_b'] + jnp.concatenate([p['bhh_b'][:H2], jnp.zeros((H,), jnp.float32)]),
            whh_all=whh_all,
            bhh_n=jnp.concatenate([p['bhh_f'][H2:3 * H],
                                   p['bhh_b'][H2:3 * H]]).reshape(1, H2),
        ))
    return dict(
        embedding=params['embedding'],
        concept_table=params['concept_table'],
        gru_layers=layers,
        wc=params['fc1_concept_w'].T, bc=params['fc1_concept_b'].reshape(1, -1),
        conv_wT=[w.T for w in params['conv_w']],                   # (F*S, NF_i)
        conv_b=[b.reshape(1, -1) for b in params['conv_b']],
        fc1_wT=params['fc1_w'].T, fc1_b=params['fc1_b'].reshape(1, -1),
        fc2_wT=params['fc2_w'].T, fc2_b=params['fc2_b'].reshape(1, -1),
    )


# ----------------------------------- forward ------------------------------------

def forward(pp, inp, cfg):
    B, L = inp.shape
    H = cfg['hidden']
    H2 = 2 * H

    # Embedding lookup directly in (L, B, D) time-major layout.
    x_lbd = jnp.take(pp['embedding'], inp.T, axis=0)               # (L, B, D)

    out_lbd = None
    for p in pp['gru_layers']:
        # Hoisted input projection for both directions, packed into one (L, B, 6H) array
        # (backward pre-reversed in time; b_ih and the r/z part of b_hh already folded in).
        gif = jnp.matmul(x_lbd, p['wih_f']) + p['bi_f']            # (L, B, 3H)
        gib = jnp.matmul(x_lbd[::-1], p['wih_b']) + p['bi_b']      # (L, B, 3H), time-reversed
        gi = jnp.concatenate(
            [gif[..., 0:H],        gib[..., 0:H],
             gif[..., H:H2],       gib[..., H:H2],
             gif[..., H2:3 * H],   gib[..., H2:3 * H]], axis=-1)   # (L, B, 6H)

        hall = bigru_layer(gi, p, B, L, H)                         # (L, B, 2H), bwd time-reversed
        # Time-align the backward direction (off the serial chain, cheap XLA re-layout):
        out_lbd = jnp.concatenate([hall[:, :, :H], hall[::-1, :, H:]], axis=-1)  # (L, B, 2H)
        x_lbd = out_lbd                                            # next layer's input

    gru2d = jnp.transpose(out_lbd, (1, 0, 2)).reshape(B * L, H2)   # b-major rows for the head
    ctab = jnp.take(pp['concept_table'], inp.reshape(-1), axis=0)  # (B*L, K, D)
    return concept_conv_head(gru2d, ctab, pp, cfg, B, L)


# ------------------------------- parameter init ----------------------------------

def init_params(key, cfg):
    D, H = cfg['word_dim'], cfg['hidden']
    V, K, C = cfg['vocab'], cfg['n_concepts'], cfg['n_classes']
    keys = iter(jax.random.split(key, 64))

    def u(shape, scale=0.1):
        return jax.random.uniform(next(keys), shape, jnp.float32, -scale, scale)

    emb = u((V + 2, D)).at[V + 1].set(0.0)              # padding_idx = VOCAB_SIZE + 1

    gru_layers, din = [], D
    for _ in range(cfg['num_layers']):
        gru_layers.append(dict(
            wih_f=u((3 * H, din)), whh_f=u((3 * H, H)), bih_f=u((3 * H,)), bhh_f=u((3 * H,)),
            wih_b=u((3 * H, din)), whh_b=u((3 * H, H)), bih_b=u((3 * H,)), bhh_b=u((3 * H,)),
        ))
        din = 2 * H

    concept_table = u((V + 2, K, D), 0.01).at[V + 1].set(0.0)   # padded word -> zero concepts

    conv_w, conv_b = [], []
    for i, F in enumerate(cfg['filters']):
        ksize = 2 * D * F                                        # WORD_DIM * FILTERS[i] * 2
        conv_w.append(u((cfg['filter_num'][i], ksize)))
        conv_b.append(u((cfg['filter_num'][i],)))

    return dict(
        embedding=emb,
        gru_layers=gru_layers,
        fc1_concept_w=u((D, 2 * H)), fc1_concept_b=u((D,)),
        concept_table=concept_table,
        conv_w=conv_w, conv_b=conv_b,
        fc1_w=u((100, sum(cfg['filter_num']))), fc1_b=u((100,)),
        fc2_w=u((C, 100)), fc2_b=u((C,)),
    )


if __name__ == "__main__":
    cfg = dict(
        batch=2,
        max_len=8,            # MAX_SENT_LEN
        vocab=20,             # VOCAB_SIZE (embedding has VOCAB_SIZE + 2 rows)
        word_dim=32,          # WORD_DIM
        hidden=16,            # hidden_size == WORD_DIM // 2 (required by conv stride = 2*WORD_DIM)
        num_layers=1,
        filters=[2, 3],       # filter_size
        filter_num=[4, 6],    # number_of_filters
        n_classes=3,
        n_concepts=4,         # synthetic concepts per vocab word
    )
    assert cfg['hidden'] * 2 == cfg['word_dim']

    key = jax.random.PRNGKey(0)
    pkey, ikey = jax.random.split(key)
    params = init_params(pkey, cfg)
    pp = prep_params(params, cfg)
    inp = jax.random.randint(ikey, (cfg['batch'], cfg['max_len']),
                             0, cfg['vocab'] + 2, dtype=jnp.int32)

    fwd = jax.jit(functools.partial(forward, cfg=cfg))
    out = jax.block_until_ready(fwd(pp, inp))

    assert out.shape == (cfg['batch'], cfg['n_classes'])
    assert bool(jnp.all(jnp.isfinite(out)))
    # exact final softmax -> rows sum to 1 within float error
    assert bool(jnp.allclose(jnp.sum(out, axis=1), 1.0, atol=1e-5))
    print("KERNEL_OK")
</pallas_src>

<mosaic_0001>
module attributes {stable_mosaic.version = 11 : i64} {
  func.func @_bigru_layer_kernel(%arg0: memref<8x2x96xf32, #tpu.memory_space<vmem>>, %arg1: memref<32x96xf32, #tpu.memory_space<vmem>>, %arg2: memref<1x32xf32, #tpu.memory_space<vmem>>, %arg3: memref<8x2x32xf32, #tpu.memory_space<vmem>>) attributes {dimension_semantics = [], scalar_prefetch = 0 : i64, scratch_operands = 0 : i64, tpu.core_type = #tpu.core_type<tc>} {
    %c0 = arith.constant 0 : index
    %c0_0 = arith.constant 0 : index
    %0 = vector.load %arg1[%c0, %c0_0] : memref<32x96xf32, #tpu.memory_space<vmem>>, vector<32x96xf32>
    %c0_1 = arith.constant 0 : index
    %c0_2 = arith.constant 0 : index
    %1 = vector.load %arg2[%c0_1, %c0_2] : memref<1x32xf32, #tpu.memory_space<vmem>>, vector<1x32xf32>
    %2 = vector.shape_cast %1 : vector<1x32xf32> to vector<1x32xf32>
    %3 = vector.broadcast %2 : vector<1x32xf32> to vector<2x32xf32>
    %cst = arith.constant 0.000000e+00 : f32
    %4 = vector.broadcast %cst : f32 to vector<2x32xf32>
    %c0_i32 = arith.constant 0 : i32
    %cst_3 = arith.constant dense<0.000000e+00> : vector<2x96xf32>
    %5 = tpu.matmul %4, %0, %cst_3 {dimension_numbers = #tpu.dot_dimension_numbers<[1], [0], [0], [1], [0, 0, 1, 1], [], []>} : vector<2x32xf32>, vector<32x96xf32>, vector<2x96xf32> -> vector<2x96xf32>
    %6 = arith.index_cast %c0_i32 : i32 to index
    %c0_4 = arith.constant 0 : index
    %c0_5 = arith.constant 0 : index
    %7 = vector.load %arg0[%6, %c0_4, %c0_5] : memref<8x2x96xf32, #tpu.memory_space<vmem>>, vector<1x2x96xf32>
    %8 = vector.shape_cast %7 : vector<1x2x96xf32> to vector<2x96xf32>
    %9 = vector.extract_strided_slice %8 {offsets = [0, 0], sizes = [2, 32], strides = [1, 1]} : vector<2x96xf32> to vector<2x32xf32>
    %10 = vector.extract_strided_slice %5 {offsets = [0, 0], sizes = [2, 32], strides = [1, 1]} : vector<2x96xf32> to vector<2x32xf32>
    %11 = arith.addf %9, %10 : vector<2x32xf32>
    %12 = arith.negf %11 : vector<2x32xf32>
    %13 = math.exp %12 : vector<2x32xf32>
    %cst_6 = arith.constant 1.000000e+00 : f32
    %14 = vector.broadcast %cst_6 : f32 to vector<2x32xf32>
    %15 = arith.addf %14, %13 : vector<2x32xf32>
    %16 = arith.divf %14, %15 : vector<2x32xf32>
    %17 = vector.extract_strided_slice %8 {offsets = [0, 32], sizes = [2, 32], strides = [1, 1]} : vector<2x96xf32> to vector<2x32xf32>
    %18 = vector.extract_strided_slice %5 {offsets = [0, 32], sizes = [2, 32], strides = [1, 1]} : vector<2x96xf32> to vector<2x32xf32>
    %19 = arith.addf %17, %18 : vector<2x32xf32>
    %20 = arith.negf %19 : vector<2x32xf32>
    %21 = math.exp %20 : vector<2x32xf32>
    %cst_7 = arith.constant 1.000000e+00 : f32
    %22 = vector.broadcast %cst_7 : f32 to vector<2x32xf32>
    %23 = arith.addf %22, %21 : vector<2x32xf32>
    %24 = arith.divf %22, %23 : vector<2x32xf32>
    %25 = vector.extract_strided_slice %8 {offsets = [0, 64], sizes = [2, 32], strides = [1, 1]} : vector<2x96xf32> to vector<2x32xf32>
    %26 = vector.extract_strided_slice %5 {offsets = [0, 64], sizes = [2, 32], strides = [1, 1]} : vector<2x96xf32> to vector<2x32xf32>
    %27 = arith.addf %26, %3 : vector<2x32xf32>
    %28 = arith.mulf %16, %27 : vector<2x32xf32>
    %29 = arith.addf %25, %28 : vector<2x32xf32>
    %30 = math.tanh %29 : vector<2x32xf32>
    %cst_8 = arith.constant 1.000000e+00 : f32
    %31 = vector.broadcast %cst_8 : f32 to vector<2x32xf32>
    %32 = arith.subf %31, %24 : vector<2x32xf32>
    %33 = arith.mulf %32, %30 : vector<2x32xf32>
    %34 = arith.mulf %24, %4 : vector<2x32xf32>
    %35 = arith.addf %33, %34 : vector<2x32xf32>
    %36 = arith.index_cast %c0_i32 : i32 to index
    %c0_9 = arith.constant 0 : index
    %c0_10 = arith.constant 0 : index
    %37 = vector.load %arg3[%36, %c0_9, %c0_10] : memref<8x2x32xf32, #tpu.memory_space<vmem>>, vector<1x2x32xf32>
    %38 = vector.shape_cast %37 : vector<1x2x32xf32> to vector<2x32xf32>
    %39 = vector.shape_cast %35 : vector<2x32xf32> to vector<1x2x32xf32>
    tpu.vector_store %arg3[%36, %c0_9, %c0_10], %39 {strides = array<i32>} : memref<8x2x32xf32, #tpu.memory_space<vmem>>, vector<1x2x32xf32>,
    %c1_i32 = arith.constant 1 : i32
    %cst_11 = arith.constant dense<0.000000e+00> : vector<2x96xf32>
    %40 = tpu.matmul %35, %0, %cst_11 {dimension_numbers = #tpu.dot_dimension_numbers<[1], [0], [0], [1], [0, 0, 1, 1], [], []>} : vector<2x32xf32>, vector<32x96xf32>, vector<2x96xf32> -> vector<2x96xf32>
    %41 = arith.index_cast %c1_i32 : i32 to index
    %c0_12 = arith.constant 0 : index
    %c0_13 = arith.constant 0 : index
    %42 = vector.load %arg0[%41, %c0_12, %c0_13] : memref<8x2x96xf32, #tpu.memory_space<vmem>>, vector<1x2x96xf32>
    %43 = vector.shape_cast %42 : vector<1x2x96xf32> to vector<2x96xf32>
    %44 = vector.extract_strided_slice %43 {offsets = [0, 0], sizes = [2, 32], strides = [1, 1]} : vector<2x96xf32> to vector<2x32xf32>
    %45 = vector.extract_strided_slice %40 {offsets = [0, 0], sizes = [2, 32], strides = [1, 1]} : vector<2x96xf32> to vector<2x32xf32>
    %46 = arith.addf %44, %45 : vector<2x32xf32>
    %47 = arith.negf %46 : vector<2x32xf32>
    %48 = math.exp %47 : vector<2x32xf32>
    %cst_14 = arith.constant 1.000000e+00 : f32
    %49 = vector.broadcast %cst_14 : f32 to vector<2x32xf32>
    %50 = arith.addf %49, %48 : vector<2x32xf32>
    %51 = arith.divf %49, %50 : vector<2x32xf32>
    %52 = vector.extract_strided_slice %43 {offsets = [0, 32], sizes = [2, 32], strides = [1, 1]} : vector<2x96xf32> to vector<2x32xf32>
    %53 = vector.extract_strided_slice %40 {offsets = [0, 32], sizes = [2, 32], strides = [1, 1]} : vector<2x96xf32> to vector<2x32xf32>
    %54 = arith.addf %52, %53 : vector<2x32xf32>
    %55 = arith.negf %54 : vector<2x32xf32>
    %56 = math.exp %55 : vector<2x32xf32>
    %cst_15 = arith.constant 1.000000e+00 : f32
    %57 = vector.broadcast %cst_15 : f32 to vector<2x32xf32>
    %58 = arith.addf %57, %56 : vector<2x32xf32>
    %59 = arith.divf %57, %58 : vector<2x32xf32>
    %60 = vector.extract_strided_slice %43 {offsets = [0, 64], sizes = [2, 32], strides = [1, 1]} : vector<2x96xf32> to vector<2x32xf32>
    %61 = vector.extract_strided_slice %40 {offsets = [0, 64], sizes = [2, 32], strides = [1, 1]} : vector<2x96xf32> to vector<2x32xf32>
    %62 = arith.addf %61, %3 : vector<2x32xf32>
    %63 = arith.mulf %51, %62 : vector<2x32xf32>
    %64 = arith.addf %60, %63 : vector<2x32xf32>
    %65 = math.tanh %64 : vector<2x32xf32>
    %cst_16 = arith.constant 1.000000e+00 : f32
    %66 = vector.broadcast %cst_16 : f32 to vector<2x32xf32>
    %67 = arith.subf %66, %59 : vector<2x32xf32>
    %68 = arith.mulf %67, %65 : vector<2x32xf32>
    %69 = arith.mulf %59, %35 : vector<2x32xf32>
    %70 = arith.addf %68, %69 : vector<2x32xf32>
    %71 = arith.index_cast %c1_i32 : i32 to index
    %c0_17 = arith.constant 0 : index
    %c0_18 = arith.constant 0 : index
    %72 = vector.load %arg3[%71, %c0_17, %c0_18] : memref<8x2x32xf32, #tpu.memory_space<vmem>>, vector<1x2x32xf32>
    %73 = vector.shape_cast %72 : vector<1x2x32xf32> to vector<2x32xf32>
    %74 = vector.shape_cast %70 : vector<2x32xf32> to vector<1x2x32xf32>
    tpu.vector_store %arg3[%71, %c0_17, %c0_18], %74 {strides = array<i32>} : memref<8x2x32xf32, #tpu.memory_space<vmem>>, vector<1x2x32xf32>,
    %c2_i32 = arith.constant 2 : i32
    %cst_19 = arith.constant dense<0.000000e+00> : vector<2x96xf32>
    %75 = tpu.matmul %70, %0, %cst_19 {dimension_numbers = #tpu.dot_dimension_numbers<[1], [0], [0], [1], [0, 0, 1, 1], [], []>} : vector<2x32xf32>, vector<32x96xf32>, vector<2x96xf32> -> vector<2x96xf32>
    %76 = arith.index_cast %c2_i32 : i32 to index
    %c0_20 = arith.constant 0 : index
    %c0_21 = arith.constant 0 : index
    %77 = vector.load %arg0[%76, %c0_20, %c0_21] : memref<8x2x96xf32, #tpu.memory_space<vmem>>, vector<1x2x96xf32>
    %78 = vector.shape_cast %77 : vector<1x2x96xf32> to vector<2x96xf32>
    %79 = vector.extract_strided_slice %78 {offsets = [0, 0], sizes = [2, 32], strides = [1, 1]} : vector<2x96xf32> to vector<2x32xf32>
    %80 = vector.extract_strided_slice %75 {offsets = [0, 0], sizes = [2, 32], strides = [1, 1]} : vector<2x96xf32> to vector<2x32xf32>
    %81 = arith.addf %79, %80 : vector<2x32xf32>
    %82 = arith.negf %81 : vector<2x32xf32>
    %83 = math.exp %82 : vector<2x32xf32>
    %cst_22 = arith.constant 1.000000e+00 : f32
    %84 = vector.broadcast %cst_22 : f32 to vector<2x32xf32>
    %85 = arith.addf %84, %83 : vector<2x32xf32>
    %86 = arith.divf %84, %85 : vector<2x32xf32>
    %87 = vector.extract_strided_slice %78 {offsets = [0, 32], sizes = [2, 32], strides = [1, 1]} : vector<2x96xf32> to vector<2x32xf32>
    %88 = vector.extract_strided_slice %75 {offsets = [0, 32], sizes = [2, 32], strides = [1, 1]} : vector<2x96xf32> to vector<2x32xf32>
    %89 = arith.addf %87, %88 : vector<2x32xf32>
    %90 = arith.negf %89 : vector<2x32xf32>
    %91 = math.exp %90 : vector<2x32xf32>
    %cst_23 = arith.constant 1.000000e+00 : f32
    %92 = vector.broadcast %cst_23 : f32 to vector<2x32xf32>
    %93 = arith.addf %92, %91 : vector<2x32xf32>
    %94 = arith.divf %92, %93 : vector<2x32xf32>
    %95 = vector.extract_strided_slice %78 {offsets = [0, 64], sizes = [2, 32], strides = [1, 1]} : vector<2x96xf32> to vector<2x32xf32>
    %96 = vector.extract_strided_slice %75 {offsets = [0, 64], sizes = [2, 32], strides = [1, 1]} : vector<2x96xf32> to vector<2x32xf32>
    %97 = arith.addf %96, %3 : vector<2x32xf32>
    %98 = arith.mulf %86, %97 : vector<2x32xf32>
    %99 = arith.addf %95, %98 : vector<2x32xf32>
    %100 = math.tanh %99 : vector<2x32xf32>
    %cst_24 = arith.constant 1.000000e+00 : f32
    %101 = vector.broadcast %cst_24 : f32 to vector<2x32xf32>
    %102 = arith.subf %101, %94 : vector<2x32xf32>
    %103 = arith.mulf %102, %100 : vector<2x32xf32>
    %104 = arith.mulf %94, %70 : vector<2x32xf32>
    %105 = arith.addf %103, %104 : vector<2x32xf32>
    %106 = arith.index_cast %c2_i32 : i32 to index
    %c0_25 = arith.constant 0 : index
    %c0_26 = arith.constant 0 : index
    %107 = vector.load %arg3[%106, %c0_25, %c0_26] : memref<8x2x32xf32, #tpu.memory_space<vmem>>, vector<1x2x32xf32>
    %108 = vector.shape_cast %107 : vector<1x2x32xf32> to vector<2x32xf32>
    %109 = vector.shape_cast %105 : vector<2x32xf32> to vector<1x2x32xf32>
    tpu.vector_store %arg3[%106, %c0_25, %c0_26], %109 {strides = array<i32>} : memref<8x2x32xf32, #tpu.memory_space<vmem>>, vector<1x2x32xf32>,
    %c3_i32 = arith.constant 3 : i32
    %cst_27 = arith.constant dense<0.000000e+00> : vector<2x96xf32>
    %110 = tpu.matmul %105, %0, %cst_27 {dimension_numbers = #tpu.dot_dimension_numbers<[1], [0], [0], [1], [0, 0, 1, 1], [], []>} : vector<2x32xf32>, vector<32x96xf32>, vector<2x96xf32> -> vector<2x96xf32>
    %111 = arith.index_cast %c3_i32 : i32 to index
    %c0_28 = arith.constant 0 : index
    %c0_29 = arith.constant 0 : index
    %112 = vector.load %arg0[%111, %c0_28, %c0_29] : memref<8x2x96xf32, #tpu.memory_space<vmem>>, vector<1x2x96xf32>
    %113 = vector.shape_cast %112 : vector<1x2x96xf32> to vector<2x96xf32>
    %114 = vector.extract_strided_slice %113 {offsets = [0, 0], sizes = [2, 32], strides = [1, 1]} : vector<2x96xf32> to vector<2x32xf32>
    %115 = vector.extract_strided_slice %110 {offsets = [0, 0], sizes = [2, 32], strides = [1, 1]} : vector<2x96xf32> to vector<2x32xf32>
    %116 = arith.addf %114, %115 : vector<2x32xf32>
    %117 = arith.negf %116 : vector<2x32xf32>
    %118 = math.exp %117 : vector<2x32xf32>
    %cst_30 = arith.constant 1.000000e+00 : f32
    %119 = vector.broadcast %cst_30 : f32 to vector<2x32xf32>
    %120 = arith.addf %119, %118 : vector<2x32xf32>
    %121 = arith.divf %119, %120 : vector<2x32xf32>
    %122 = vector.extract_strided_slice %113 {offsets = [0, 32], sizes = [2, 32], strides = [1, 1]} : vector<2x96xf32> to vector<2x32xf32>
    %123 = vector.extract_strided_slice %110 {offsets = [0, 32], sizes = [2, 32], strides = [1, 1]} : vector<2x96xf32> to vector<2x32xf32>
    %124 = arith.addf %122, %123 : vector<2x32xf32>
    %125 = arith.negf %124 : vector<2x32xf32>
    %126 = math.exp %125 : vector<2x32xf32>
    %cst_31 = arith.constant 1.000000e+00 : f32
    %127 = vector.broadcast %cst_31 : f32 to vector<2x32xf32>
    %128 = arith.addf %127, %126 : vector<2x32xf32>
    %129 = arith.divf %127, %128 : vector<2x32xf32>
    %130 = vector.extract_strided_slice %113 {offsets = [0, 64], sizes = [2, 32], strides = [1, 1]} : vector<2x96xf32> to vector<2x32xf32>
    %131 = vector.extract_strided_slice %110 {offsets = [0, 64], sizes = [2, 32], strides = [1, 1]} : vector<2x96xf32> to vector<2x32xf32>
    %132 = arith.addf %131, %3 : vector<2x32xf32>
    %133 = arith.mulf %121, %132 : vector<2x32xf32>
    %134 = arith.addf %130, %133 : vector<2x32xf32>
    %135 = math.tanh %134 : vector<2x32xf32>
    %cst_32 = arith.constant 1.000000e+00 : f32
    %136 = vector.broadcast %cst_32 : f32 to vector<2x32xf32>
    %137 = arith.subf %136, %129 : vector<2x32xf32>
    %138 = arith.mulf %137, %135 : vector<2x32xf32>
    %139 = arith.mulf %129, %105 : vector<2x32xf32>
    %140 = arith.addf %138, %139 : vector<2x32xf32>
    %141 = arith.index_cast %c3_i32 : i32 to index
    %c0_33 = arith.constant 0 : index
    %c0_34 = arith.constant 0 : index
    %142 = vector.load %arg3[%141, %c0_33, %c0_34] : memref<8x2x32xf32, #tpu.memory_space<vmem>>, vector<1x2x32xf32>
    %143 = vector.shape_cast %142 : vector<1x2x32xf32> to vector<2x32xf32>
    %144 = vector.shape_cast %140 : vector<2x32xf32> to vector<1x2x32xf32>
    tpu.vector_store %arg3[%141, %c0_33, %c0_34], %144 {strides = array<i32>} : memref<8x2x32xf32, #tpu.memory_space<vmem>>, vector<1x2x32xf32>,
    %c4_i32 = arith.constant 4 : i32
    %cst_35 = arith.constant dense<0.000000e+00> : vector<2x96xf32>
    %145 = tpu.matmul %140, %0, %cst_35 {dimension_numbers = #tpu.dot_dimension_numbers<[1], [0], [0], [1], [0, 0, 1, 1], [], []>} : vector<2x32xf32>, vector<32x96xf32>, vector<2x96xf32> -> vector<2x96xf32>
    %146 = arith.index_cast %c4_i32 : i32 to index
    %c0_36 = arith.constant 0 : index
    %c0_37 = arith.constant 0 : index
    %147 = vector.load %arg0[%146, %c0_36, %c0_37] : memref<8x2x96xf32, #tpu.memory_space<vmem>>, vector<1x2x96xf32>
    %148 = vector.shape_cast %147 : vector<1x2x96xf32> to vector<2x96xf32>
    %149 = vector.extract_strided_slice %148 {offsets = [0, 0], sizes = [2, 32], strides = [1, 1]} : vector<2x96xf32> to vector<2x32xf32>
    %150 = vector.extract_strided_slice %145 {offsets = [0, 0], sizes = [2, 32], strides = [1, 1]} : vector<2x96xf32> to vector<2x32xf32>
    %151 = arith.addf %149, %150 : vector<2x32xf32>
    %152 = arith.negf %151 : vector<2x32xf32>
    %153 = math.exp %152 : vector<2x32xf32>
    %cst_38 = arith.constant 1.000000e+00 : f32
    %154 = vector.broadcast %cst_38 : f32 to vector<2x32xf32>
    %155 = arith.addf %154, %153 : vector<2x32xf32>
    %156 = arith.divf %154, %155 : vector<2x32xf32>
    %157 = vector.extract_strided_slice %148 {offsets = [0, 32], sizes = [2, 32], strides = [1, 1]} : vector<2x96xf32> to vector<2x32xf32>
    %158 = vector.extract_strided_slice %145 {offsets = [0, 32], sizes = [2, 32], strides = [1, 1]} : vector<2x96xf32> to vector<2x32xf32>
    %159 = arith.addf %157, %158 : vector<2x32xf32>
    %160 = arith.negf %159 : vector<2x32xf32>
    %161 = math.exp %160 : vector<2x32xf32>
    %cst_39 = arith.constant 1.000000e+00 : f32
    %162 = vector.broadcast %cst_39 : f32 to vector<2x32xf32>
    %163 = arith.addf %162, %161 : vector<2x32xf32>
    %164 = arith.divf %162, %163 : vector<2x32xf32>
    %165 = vector.extract_strided_slice %148 {offsets = [0, 64], sizes = [2, 32], strides = [1, 1]} : vector<2x96xf32> to vector<2x32xf32>
    %166 = vector.extract_strided_slice %145 {offsets = [0, 64], sizes = [2, 32], strides = [1, 1]} : vector<2x96xf32> to vector<2x32xf32>
    %167 = arith.addf %166, %3 : vector<2x32xf32>
    %168 = arith.mulf %156, %167 : vector<2x32xf32>
    %169 = arith.addf %165, %168 : vector<2x32xf32>
    %170 = math.tanh %169 : vector<2x32xf32>
    %cst_40 = arith.constant 1.000000e+00 : f32
    %171 = vector.broadcast %cst_40 : f32 to vector<2x32xf32>
    %172 = arith.subf %171, %164 : vector<2x32xf32>
    %173 = arith.mulf %172, %170 : vector<2x32xf32>
    %174 = arith.mulf %164, %140 : vector<2x32xf32>
    %175 = arith.addf %173, %174 : vector<2x32xf32>
    %176 = arith.index_cast %c4_i32 : i32 to index
    %c0_41 = arith.constant 0 : index
    %c0_42 = arith.constant 0 : index
    %177 = vector.load %arg3[%176, %c0_41, %c0_42] : memref<8x2x32xf32, #tpu.memory_space<vmem>>, vector<1x2x32xf32>
    %178 = vector.shape_cast %177 : vector<1x2x32xf32> to vector<2x32xf32>
    %179 = vector.shape_cast %175 : vector<2x32xf32> to vector<1x2x32xf32>
    tpu.vector_store %arg3[%176, %c0_41, %c0_42], %179 {strides = array<i32>} : memref<8x2x32xf32, #tpu.memory_space<vmem>>, vector<1x2x32xf32>,
    %c5_i32 = arith.constant 5 : i32
    %cst_43 = arith.constant dense<0.000000e+00> : vector<2x96xf32>
    %180 = tpu.matmul %175, %0, %cst_43 {dimension_numbers = #tpu.dot_dimension_numbers<[1], [0], [0], [1], [0, 0, 1, 1], [], []>} : vector<2x32xf32>, vector<32x96xf32>, vector<2x96xf32> -> vector<2x96xf32>
    %181 = arith.index_cast %c5_i32 : i32 to index
    %c0_44 = arith.constant 0 : index
    %c0_45 = arith.constant 0 : index
    %182 = vector.load %arg0[%181, %c0_44, %c0_45] : memref<8x2x96xf32, #tpu.memory_space<vmem>>, vector<1x2x96xf32>
    %183 = vector.shape_cast %182 : vector<1x2x96xf32> to vector<2x96xf32>
    %184 = vector.extract_strided_slice %183 {offsets = [0, 0], sizes = [2, 32], strides = [1, 1]} : vector<2x96xf32> to vector<2x32xf32>
    %185 = vector.extract_strided_slice %180 {offsets = [0, 0], sizes = [2, 32], strides = [1, 1]} : vector<2x96xf32> to vector<2x32xf32>
    %186 = arith.addf %184, %185 : vector<2x32xf32>
    %187 = arith.negf %186 : vector<2x32xf32>
    %188 = math.exp %187 : vector<2x32xf32>
    %cst_46 = arith.constant 1.000000e+00 : f32
    %189 = vector.broadcast %cst_46 : f32 to vector<2x32xf32>
    %190 = arith.addf %189, %188 : vector<2x32xf32>
    %191 = arith.divf %189, %190 : vector<2x32xf32>
    %192 = vector.extract_strided_slice %183 {offsets = [0, 32], sizes = [2, 32], strides = [1, 1]} : vector<2x96xf32> to vector<2x32xf32>
    %193 = vector.extract_strided_slice %180 {offsets = [0, 32], sizes = [2, 32], strides = [1, 1]} : vector<2x96xf32> to vector<2x32xf32>
    %194 = arith.addf %192, %193 : vector<2x32xf32>
    %195 = arith.negf %194 : vector<2x32xf32>
    %196 = math.exp %195 : vector<2x32xf32>
    %cst_47 = arith.constant 1.000000e+00 : f32
    %197 = vector.broadcast %cst_47 : f32 to vector<2x32xf32>
    %198 = arith.addf %197, %196 : vector<2x32xf32>
    %199 = arith.divf %197, %198 : vector<2x32xf32>
    %200 = vector.extract_strided_slice %183 {offsets = [0, 64], sizes = [2, 32], strides = [1, 1]} : vector<2x96xf32> to vector<2x32xf32>
    %201 = vector.extract_strided_slice %180 {offsets = [0, 64], sizes = [2, 32], strides = [1, 1]} : vector<2x96xf32> to vector<2x32xf32>
    %202 = arith.addf %201, %3 : vector<2x32xf32>
    %203 = arith.mulf %191, %202 : vector<2x32xf32>
    %204 = arith.addf %200, %203 : vector<2x32xf32>
    %205 = math.tanh %204 : vector<2x32xf32>
    %cst_48 = arith.constant 1.000000e+00 : f32
    %206 = vector.broadcast %cst_48 : f32 to vector<2x32xf32>
    %207 = arith.subf %206, %199 : vector<2x32xf32>
    %208 = arith.mulf %207, %205 : vector<2x32xf32>
    %209 = arith.mulf %199, %175 : vector<2x32xf32>
    %210 = arith.addf %208, %209 : vector<2x32xf32>
    %211 = arith.index_cast %c5_i32 : i32 to index
    %c0_49 = arith.constant 0 : index
    %c0_50 = arith.constant 0 : index
    %212 = vector.load %arg3[%211, %c0_49, %c0_50] : memref<8x2x32xf32, #tpu.memory_space<vmem>>, vector<1x2x32xf32>
    %213 = vector.shape_cast %212 : vector<1x2x32xf32> to vector<2x32xf32>
    %214 = vector.shape_cast %210 : vector<2x32xf32> to vector<1x2x32xf32>
    tpu.vector_store %arg3[%211, %c0_49, %c0_50], %214 {strides = array<i32>} : memref<8x2x32xf32, #tpu.memory_space<vmem>>, vector<1x2x32xf32>,
    %c6_i32 = arith.constant 6 : i32
    %cst_51 = arith.constant dense<0.000000e+00> : vector<2x96xf32>
    %215 = tpu.matmul %210, %0, %cst_51 {dimension_numbers = #tpu.dot_dimension_numbers<[1], [0], [0], [1], [0, 0, 1, 1], [], []>} : vector<2x32xf32>, vector<32x96xf32>, vector<2x96xf32> -> vector<2x96xf32>
    %216 = arith.index_cast %c6_i32 : i32 to index
    %c0_52 = arith.constant 0 : index
    %c0_53 = arith.constant 0 : index
    %217 = vector.load %arg0[%216, %c0_52, %c0_53] : memref<8x2x96xf32, #tpu.memory_space<vmem>>, vector<1x2x96xf32>
    %218 = vector.shape_cast %217 : vector<1x2x96xf32> to vector<2x96xf32>
    %219 = vector.extract_strided_slice %218 {offsets = [0, 0], sizes = [2, 32], strides = [1, 1]} : vector<2x96xf32> to vector<2x32xf32>
    %220 = vector.extract_strided_slice %215 {offsets = [0, 0], sizes = [2, 32], strides = [1, 1]} : vector<2x96xf32> to vector<2x32xf32>
    %221 = arith.addf %219, %220 : vector<2x32xf32>
    %222 = arith.negf %221 : vector<2x32xf32>
    %223 = math.exp %222 : vector<2x32xf32>
    %cst_54 = arith.constant 1.000000e+00 : f32
    %224 = vector.broadcast %cst_54 : f32 to vector<2x32xf32>
    %225 = arith.addf %224, %223 : vector<2x32xf32>
    %226 = arith.divf %224, %225 : vector<2x32xf32>
    %227 = vector.extract_strided_slice %218 {offsets = [0, 32], sizes = [2, 32], strides = [1, 1]} : vector<2x96xf32> to vector<2x32xf32>
    %228 = vector.extract_strided_slice %215 {offsets = [0, 32], sizes = [2, 32], strides = [1, 1]} : vector<2x96xf32> to vector<2x32xf32>
    %229 = arith.addf %227, %228 : vector<2x32xf32>
    %230 = arith.negf %229 : vector<2x32xf32>
    %231 = math.exp %230 : vector<2x32xf32>
    %cst_55 = arith.constant 1.000000e+00 : f32
    %232 = vector.broadcast %cst_55 : f32 to vector<2x32xf32>
    %233 = arith.addf %232, %231 : vector<2x32xf32>
    %234 = arith.divf %232, %233 : vector<2x32xf32>
    %235 = vector.extract_strided_slice %218 {offsets = [0, 64], sizes = [2, 32], strides = [1, 1]} : vector<2x96xf32> to vector<2x32xf32>
    %236 = vector.extract_strided_slice %215 {offsets = [0, 64], sizes = [2, 32], strides = [1, 1]} : vector<2x96xf32> to vector<2x32xf32>
    %237 = arith.addf %236, %3 : vector<2x32xf32>
    %238 = arith.mulf %226, %237 : vector<2x32xf32>
    %239 = arith.addf %235, %238 : vector<2x32xf32>
    %240 = math.tanh %239 : vector<2x32xf32>
    %cst_56 = arith.constant 1.000000e+00 : f32
    %241 = vector.broadcast %cst_56 : f32 to vector<2x32xf32>
    %242 = arith.subf %241, %234 : vector<2x32xf32>
    %243 = arith.mulf %242, %240 : vector<2x32xf32>
    %244 = arith.mulf %234, %210 : vector<2x32xf32>
    %245 = arith.addf %243, %244 : vector<2x32xf32>
    %246 = arith.index_cast %c6_i32 : i32 to index
    %c0_57 = arith.constant 0 : index
    %c0_58 = arith.constant 0 : index
    %247 = vector.load %arg3[%246, %c0_57, %c0_58] : memref<8x2x32xf32, #tpu.memory_space<vmem>>, vector<1x2x32xf32>
    %248 = vector.shape_cast %247 : vector<1x2x32xf32> to vector<2x32xf32>
    %249 = vector.shape_cast %245 : vector<2x32xf32> to vector<1x2x32xf32>
    tpu.vector_store %arg3[%246, %c0_57, %c0_58], %249 {strides = array<i32>} : memref<8x2x32xf32, #tpu.memory_space<vmem>>, vector<1x2x32xf32>,
    %c7_i32 = arith.constant 7 : i32
    %cst_59 = arith.constant dense<0.000000e+00> : vector<2x96xf32>
    %250 = tpu.matmul %245, %0, %cst_59 {dimension_numbers = #tpu.dot_dimension_numbers<[1], [0], [0], [1], [0, 0, 1, 1], [], []>} : vector<2x32xf32>, vector<32x96xf32>, vector<2x96xf32> -> vector<2x96xf32>
    %251 = arith.index_cast %c7_i32 : i32 to index
    %c0_60 = arith.constant 0 : index
    %c0_61 = arith.constant 0 : index
    %252 = vector.load %arg0[%251, %c0_60, %c0_61] : memref<8x2x96xf32, #tpu.memory_space<vmem>>, vector<1x2x96xf32>
    %253 = vector.shape_cast %252 : vector<1x2x96xf32> to vector<2x96xf32>
    %254 = vector.extract_strided_slice %253 {offsets = [0, 0], sizes = [2, 32], strides = [1, 1]} : vector<2x96xf32> to vector<2x32xf32>
    %255 = vector.extract_strided_slice %250 {offsets = [0, 0], sizes = [2, 32], strides = [1, 1]} : vector<2x96xf32> to vector<2x32xf32>
    %256 = arith.addf %254, %255 : vector<2x32xf32>
    %257 = arith.negf %256 : vector<2x32xf32>
    %258 = math.exp %257 : vector<2x32xf32>
    %cst_62 = arith.constant 1.000000e+00 : f32
    %259 = vector.broadcast %cst_62 : f32 to vector<2x32xf32>
    %260 = arith.addf %259, %258 : vector<2x32xf32>
    %261 = arith.divf %259, %260 : vector<2x32xf32>
    %262 = vector.extract_strided_slice %253 {offsets = [0, 32], sizes = [2, 32], strides = [1, 1]} : vector<2x96xf32> to vector<2x32xf32>
    %263 = vector.extract_strided_slice %250 {offsets = [0, 32], sizes = [2, 32], strides = [1, 1]} : vector<2x96xf32> to vector<2x32xf32>
    %264 = arith.addf %262, %263 : vector<2x32xf32>
    %265 = arith.negf %264 : vector<2x32xf32>
    %266 = math.exp %265 : vector<2x32xf32>
    %cst_63 = arith.constant 1.000000e+00 : f32
    %267 = vector.broadcast %cst_63 : f32 to vector<2x32xf32>
    %268 = arith.addf %267, %266 : vector<2x32xf32>
    %269 = arith.divf %267, %268 : vector<2x32xf32>
    %270 = vector.extract_strided_slice %253 {offsets = [0, 64], sizes = [2, 32], strides = [1, 1]} : vector<2x96xf32> to vector<2x32xf32>
    %271 = vector.extract_strided_slice %250 {offsets = [0, 64], sizes = [2, 32], strides = [1, 1]} : vector<2x96xf32> to vector<2x32xf32>
    %272 = arith.addf %271, %3 : vector<2x32xf32>
    %273 = arith.mulf %261, %272 : vector<2x32xf32>
    %274 = arith.addf %270, %273 : vector<2x32xf32>
    %275 = math.tanh %274 : vector<2x32xf32>
    %cst_64 = arith.constant 1.000000e+00 : f32
    %276 = vector.broadcast %cst_64 : f32 to vector<2x32xf32>
    %277 = arith.subf %276, %269 : vector<2x32xf32>
    %278 = arith.mulf %277, %275 : vector<2x32xf32>
    %279 = arith.mulf %269, %245 : vector<2x32xf32>
    %280 = arith.addf %278, %279 : vector<2x32xf32>
    %281 = arith.index_cast %c7_i32 : i32 to index
    %c0_65 = arith.constant 0 : index
    %c0_66 = arith.constant 0 : index
    %282 = vector.load %arg3[%281, %c0_65, %c0_66] : memref<8x2x32xf32, #tpu.memory_space<vmem>>, vector<1x2x32xf32>
    %283 = vector.shape_cast %282 : vector<1x2x32xf32> to vector<2x32xf32>
    %284 = vector.shape_cast %280 : vector<2x32xf32> to vector<1x2x32xf32>
    tpu.vector_store %arg3[%281, %c0_65, %c0_66], %284 {strides = array<i32>} : memref<8x2x32xf32, #tpu.memory_space<vmem>>, vector<1x2x32xf32>,
    %c8_i32 = arith.constant 8 : i32
    return
  }
}

module attributes {stable_mosaic.version = 11 : i64} {
  func.func @_concept_head_kernel(%arg0: memref<16x32xf32, #tpu.memory_space<vmem>>, %arg1: memref<16x4x32xf32, #tpu.memory_space<vmem>>, %arg2: memref<32x32xf32, #tpu.memory_space<vmem>>, %arg3: memref<1x32xf32, #tpu.memory_space<vmem>>, %arg4: memref<128x4xf32, #tpu.memory_space<vmem>>, %arg5: memref<1x4xf32, #tpu.memory_space<vmem>>, %arg6: memref<192x6xf32, #tpu.memory_space<vmem>>, %arg7: memref<1x6xf32, #tpu.memory_space<vmem>>, %arg8: memref<10x100xf32, #tpu.memory_space<vmem>>, %arg9: memref<1x100xf32, #tpu.memory_space<vmem>>, %arg10: memref<100x3xf32, #tpu.memory_space<vmem>>, %arg11: memref<1x3xf32, #tpu.memory_space<vmem>>, %arg12: memref<2x3xf32, #tpu.memory_space<vmem>>, %arg13: memref<24x64xf32, #tpu.memory_space<vmem>>) attributes {dimension_semantics = [], scalar_prefetch = 0 : i64, scratch_operands = 1 : i64, tpu.core_type = #tpu.core_type<tc>} {
    %c0 = arith.constant 0 : index
    %c0_0 = arith.constant 0 : index
    %0 = vector.load %arg0[%c0, %c0_0] : memref<16x32xf32, #tpu.memory_space<vmem>>, vector<16x32xf32>
    %c0_1 = arith.constant 0 : index
    %c0_2 = arith.constant 0 : index
    %1 = vector.load %arg2[%c0_1, %c0_2] : memref<32x32xf32, #tpu.memory_space<vmem>>, vector<32x32xf32>
    %cst = arith.constant dense<0.000000e+00> : vector<16x32xf32>
    %2 = tpu.matmul %0, %1, %cst {dimension_numbers = #tpu.dot_dimension_numbers<[1], [0], [0], [1], [0, 0, 1, 1], [], []>} : vector<16x32xf32>, vector<32x32xf32>, vector<16x32xf32> -> vector<16x32xf32>
    %c0_3 = arith.constant 0 : index
    %c0_4 = arith.constant 0 : index
    %3 = vector.load %arg3[%c0_3, %c0_4] : memref<1x32xf32, #tpu.memory_space<vmem>>, vector<1x32xf32>
    %4 = vector.broadcast %3 : vector<1x32xf32> to vector<16x32xf32>
    %5 = arith.addf %2, %4 : vector<16x32xf32>
    %6 = math.tanh %5 : vector<16x32xf32>
    %c0_5 = arith.constant 0 : index
    %c0_6 = arith.constant 0 : index
    %c0_7 = arith.constant 0 : index
    %7 = vector.load %arg1[%c0_5, %c0_6, %c0_7] : memref<16x4x32xf32, #tpu.memory_space<vmem>>, vector<16x4x32xf32>
    %8 = vector.shape_cast %6 : vector<16x32xf32> to vector<16x1x32xf32>
    %9 = vector.broadcast %8 : vector<16x1x32xf32> to vector<16x4x32xf32>
    %10 = arith.mulf %7, %9 : vector<16x4x32xf32>
    %cst_8 = arith.constant dense<0.000000e+00> : vector<16x4xf32>
    %11 = vector.multi_reduction <add>, %10, %cst_8 [2] : vector<16x4x32xf32> to vector<16x4xf32>
    %cst_9 = arith.constant dense<0xFF800000> : vector<16xf32>
    %12 = vector.multi_reduction <maximumf>, %11, %cst_9 [1] : vector<16x4xf32> to vector<16xf32>
    %13 = vector.shape_cast %12 : vector<16xf32> to vector<16x1xf32>
    %14 = vector.broadcast %13 : vector<16x1xf32> to vector<16x4xf32>
    %15 = arith.subf %11, %14 : vector<16x4xf32>
    %16 = math.exp %15 : vector<16x4xf32>
    %cst_10 = arith.constant dense<0.000000e+00> : vector<16xf32>
    %17 = vector.multi_reduction <add>, %16, %cst_10 [1] : vector<16x4xf32> to vector<16xf32>
    %18 = vector.shape_cast %17 : vector<16xf32> to vector<16x1xf32>
    %19 = tpu.reciprocal %18 {approx = true} : vector<16x1xf32> -> vector<16x1xf32>
    %20 = vector.broadcast %19 : vector<16x1xf32> to vector<16x4xf32>
    %21 = arith.mulf %16, %20 : vector<16x4xf32>
    %22 = vector.shape_cast %21 : vector<16x4xf32> to vector<16x4x1xf32>
    %23 = vector.broadcast %22 : vector<16x4x1xf32> to vector<16x4x32xf32>
    %24 = arith.mulf %23, %7 : vector<16x4x32xf32>
    %cst_11 = arith.constant dense<0.000000e+00> : vector<16x32xf32>
    %25 = vector.multi_reduction <add>, %24, %cst_11 [1] : vector<16x4x32xf32> to vector<16x32xf32>
    %c0_12 = arith.constant 0 : index
    %c0_13 = arith.constant 0 : index
    %26 = vector.load %arg13[%c0_12, %c0_13] : memref<24x64xf32, #tpu.memory_space<vmem>>, vector<16x32xf32>
    tpu.vector_store %arg13[%c0_12, %c0_13], %0 {strides = array<i32>} : memref<24x64xf32, #tpu.memory_space<vmem>>, vector<16x32xf32>,
    %c0_14 = arith.constant 0 : index
    %c32 = arith.constant 32 : index
    %27 = vector.load %arg13[%c0_14, %c32] : memref<24x64xf32, #tpu.memory_space<vmem>>, vector<16x32xf32>
    tpu.vector_store %arg13[%c0_14, %c32], %25 {strides = array<i32>} : memref<24x64xf32, #tpu.memory_space<vmem>>, vector<16x32xf32>,
    %cst_15 = arith.constant 0.000000e+00 : f32
    %28 = vector.broadcast %cst_15 : f32 to vector<8x64xf32>
    %c16 = arith.constant 16 : index
    %c0_16 = arith.constant 0 : index
    %29 = vector.load %arg13[%c16, %c0_16] : memref<24x64xf32, #tpu.memory_space<vmem>>, vector<8x64xf32>
    tpu.vector_store %arg13[%c16, %c0_16], %28 {strides = array<i32>} : memref<24x64xf32, #tpu.memory_space<vmem>>, vector<8x64xf32>,
    %30 = tpu.iota {dimensions = array<i32: 0>} : vector<16x1xi32>
    %c8_i32 = arith.constant 8 : i32
    %c0_i32 = arith.constant 0 : i32
    %31 = arith.cmpi eq, %c8_i32, %c0_i32 : i32
    %c1_i32 = arith.constant 1 : i32
    %32 = arith.select %31, %c1_i32, %c8_i32 : i32
    %33 = vector.broadcast %32 : i32 to vector<16x1xi32>
    %34 = arith.remsi %30, %33 : vector<16x1xi32>
    %c0_i32_17 = arith.constant 0 : i32
    %35 = vector.broadcast %c0_i32_17 : i32 to vector<16x1xi32>
    %36 = arith.cmpi ne, %34, %35 : vector<16x1xi32>
    %c0_i32_18 = arith.constant 0 : i32
    %37 = vector.broadcast %c0_i32_18 : i32 to vector<16x1xi32>
    %38 = arith.cmpi slt, %34, %37 : vector<16x1xi32>
    %c0_i32_19 = arith.constant 0 : i32
    %39 = arith.cmpi slt, %32, %c0_i32_19 : i32
    %40 = vector.broadcast %39 : i1 to vector<16x1xi1>
    %41 = vector.broadcast %40 : vector<16x1xi1> to vector<16x1xi1>
    %42 = arith.xori %38, %41 : vector<16x1xi1>
    %43 = arith.andi %42, %36 : vector<16x1xi1>
    %44 = vector.broadcast %32 : i32 to vector<16x1xi32>
    %45 = arith.addi %34, %44 : vector<16x1xi32>
    %46 = arith.select %43, %45, %34 : vector<16x1xi1>, vector<16x1xi32>
    %c0_20 = arith.constant 0 : index
    %c0_21 = arith.constant 0 : index
    %47 = vector.load %arg13[%c0_20, %c0_21] : memref<24x64xf32, #tpu.memory_space<vmem>>, vector<16x64xf32>
    %c0_22 = arith.constant 0 : index
    %c0_23 = arith.constant 0 : index
    %48 = vector.load %arg4[%c0_22, %c0_23] : memref<128x4xf32, #tpu.memory_space<vmem>>, vector<64x4xf32>
    %cst_24 = arith.constant dense<0.000000e+00> : vector<16x4xf32>
    %49 = tpu.matmul %47, %48, %cst_24 {dimension_numbers = #tpu.dot_dimension_numbers<[1], [0], [0], [1], [0, 0, 1, 1], [], []>} : vector<16x64xf32>, vector<64x4xf32>, vector<16x4xf32> -> vector<16x4xf32>
    %c1 = arith.constant 1 : index
    %c0_25 = arith.constant 0 : index
    %50 = vector.load %arg13[%c1, %c0_25] : memref<24x64xf32, #tpu.memory_space<vmem>>, vector<16x64xf32>
    %c64 = arith.constant 64 : index
    %c0_26 = arith.constant 0 : index
    %51 = vector.load %arg4[%c64, %c0_26] : memref<128x4xf32, #tpu.memory_space<vmem>>, vector<64x4xf32>
    %cst_27 = arith.constant dense<0.000000e+00> : vector<16x4xf32>
    %52 = tpu.matmul %50, %51, %cst_27 {dimension_numbers = #tpu.dot_dimension_numbers<[1], [0], [0], [1], [0, 0, 1, 1], [], []>} : vector<16x64xf32>, vector<64x4xf32>, vector<16x4xf32> -> vector<16x4xf32>
    %53 = arith.addf %49, %52 : vector<16x4xf32>
    %c0_28 = arith.constant 0 : index
    %c0_29 = arith.constant 0 : index
    %54 = vector.load %arg5[%c0_28, %c0_29] : memref<1x4xf32, #tpu.memory_space<vmem>>, vector<1x4xf32>
    %55 = vector.broadcast %54 : vector<1x4xf32> to vector<16x4xf32>
    %56 = arith.addf %53, %55 : vector<16x4xf32>
    %cst_30 = arith.constant 0.000000e+00 : f32
    %57 = vector.broadcast %cst_30 : f32 to vector<16x4xf32>
    %58 = arith.maximumf %56, %57 : vector<16x4xf32>
    %c6_i32 = arith.constant 6 : i32
    %59 = vector.broadcast %c6_i32 : i32 to vector<16x1xi32>
    %60 = arith.cmpi sle, %46, %59 : vector<16x1xi32>
    %cst_31 = arith.constant 0.000000e+00 : f32
    %61 = vector.shape_cast %60 : vector<16x1xi1> to vector<16x1xi1>
    %62 = vector.broadcast %61 : vector<16x1xi1> to vector<16x4xi1>
    %63 = vector.broadcast %cst_31 : f32 to vector<16x4xf32>
    %64 = arith.select %62, %58, %63 : vector<16x4xi1>, vector<16x4xf32>
    %65 = vector.shape_cast %64 : vector<16x4xf32> to vector<2x8x4xf32>
    %cst_32 = arith.constant dense<0xFF800000> : vector<2x4xf32>
    %66 = vector.multi_reduction <maximumf>, %65, %cst_32 [1] : vector<2x8x4xf32> to vector<2x4xf32>
    %c0_33 = arith.constant 0 : index
    %c0_34 = arith.constant 0 : index
    %67 = vector.load %arg13[%c0_33, %c0_34] : memref<24x64xf32, #tpu.memory_space<vmem>>, vector<16x64xf32>
    %c0_35 = arith.constant 0 : index
    %c0_36 = arith.constant 0 : index
    %68 = vector.load %arg6[%c0_35, %c0_36] : memref<192x6xf32, #tpu.memory_space<vmem>>, vector<64x6xf32>
    %cst_37 = arith.constant dense<0.000000e+00> : vector<16x6xf32>
    %69 = tpu.matmul %67, %68, %cst_37 {dimension_numbers = #tpu.dot_dimension_numbers<[1], [0], [0], [1], [0, 0, 1, 1], [], []>} : vector<16x64xf32>, vector<64x6xf32>, vector<16x6xf32> -> vector<16x6xf32>
    %c1_38 = arith.constant 1 : index
    %c0_39 = arith.constant 0 : index
    %70 = vector.load %arg13[%c1_38, %c0_39] : memref<24x64xf32, #tpu.memory_space<vmem>>, vector<16x64xf32>
    %c64_40 = arith.constant 64 : index
    %c0_41 = arith.constant 0 : index
    %71 = vector.load %arg6[%c64_40, %c0_41] : memref<192x6xf32, #tpu.memory_space<vmem>>, vector<64x6xf32>
    %cst_42 = arith.constant dense<0.000000e+00> : vector<16x6xf32>
    %72 = tpu.matmul %70, %71, %cst_42 {dimension_numbers = #tpu.dot_dimension_numbers<[1], [0], [0], [1], [0, 0, 1, 1], [], []>} : vector<16x64xf32>, vector<64x6xf32>, vector<16x6xf32> -> vector<16x6xf32>
    %73 = arith.addf %69, %72 : vector<16x6xf32>
    %c2 = arith.constant 2 : index
    %c0_43 = arith.constant 0 : index
    %74 = vector.load %arg13[%c2, %c0_43] : memref<24x64xf32, #tpu.memory_space<vmem>>, vector<16x64xf32>
    %c128 = arith.constant 128 : index
    %c0_44 = arith.constant 0 : index
    %75 = vector.load %arg6[%c128, %c0_44] : memref<192x6xf32, #tpu.memory_space<vmem>>, vector<64x6xf32>
    %cst_45 = arith.constant dense<0.000000e+00> : vector<16x6xf32>
    %76 = tpu.matmul %74, %75, %cst_45 {dimension_numbers = #tpu.dot_dimension_numbers<[1], [0], [0], [1], [0, 0, 1, 1], [], []>} : vector<16x64xf32>, vector<64x6xf32>, vector<16x6xf32> -> vector<16x6xf32>
    %77 = arith.addf %73, %76 : vector<16x6xf32>
    %c0_46 = arith.constant 0 : index
    %c0_47 = arith.constant 0 : index
    %78 = vector.load %arg7[%c0_46, %c0_47] : memref<1x6xf32, #tpu.memory_space<vmem>>, vector<1x6xf32>
    %79 = vector.broadcast %78 : vector<1x6xf32> to vector<16x6xf32>
    %80 = arith.addf %77, %79 : vector<16x6xf32>
    %cst_48 = arith.constant 0.000000e+00 : f32
    %81 = vector.broadcast %cst_48 : f32 to vector<16x6xf32>
    %82 = arith.maximumf %80, %81 : vector<16x6xf32>
    %c5_i32 = arith.constant 5 : i32
    %83 = vector.broadcast %c5_i32 : i32 to vector<16x1xi32>
    %84 = arith.cmpi sle, %46, %83 : vector<16x1xi32>
    %cst_49 = arith.constant 0.000000e+00 : f32
    %85 = vector.shape_cast %84 : vector<16x1xi1> to vector<16x1xi1>
    %86 = vector.broadcast %85 : vector<16x1xi1> to vector<16x6xi1>
    %87 = vector.broadcast %cst_49 : f32 to vector<16x6xf32>
    %88 = arith.select %86, %82, %87 : vector<16x6xi1>, vector<16x6xf32>
    %89 = vector.shape_cast %88 : vector<16x6xf32> to vector<2x8x6xf32>
    %cst_50 = arith.constant dense<0xFF800000> : vector<2x6xf32>
    %90 = vector.multi_reduction <maximumf>, %89, %cst_50 [1] : vector<2x8x6xf32> to vector<2x6xf32>
    %91 = tpu.concatenate %66, %90 in 1 : vector<2x4xf32>, vector<2x6xf32> -> vector<2x10xf32>
    %c0_51 = arith.constant 0 : index
    %c0_52 = arith.constant 0 : index
    %92 = vector.load %arg8[%c0_51, %c0_52] : memref<10x100xf32, #tpu.memory_space<vmem>>, vector<10x100xf32>
    %cst_53 = arith.constant dense<0.000000e+00> : vector<2x100xf32>
    %93 = tpu.matmul %91, %92, %cst_53 {dimension_numbers = #tpu.dot_dimension_numbers<[1], [0], [0], [1], [0, 0, 1, 1], [], []>} : vector<2x10xf32>, vector<10x100xf32>, vector<2x100xf32> -> vector<2x100xf32>
    %c0_54 = arith.constant 0 : index
    %c0_55 = arith.constant 0 : index
    %94 = vector.load %arg9[%c0_54, %c0_55] : memref<1x100xf32, #tpu.memory_space<vmem>>, vector<1x100xf32>
    %95 = vector.broadcast %94 : vector<1x100xf32> to vector<2x100xf32>
    %96 = arith.addf %93, %95 : vector<2x100xf32>
    %97 = math.tanh %96 : vector<2x100xf32>
    %c0_56 = arith.constant 0 : index
    %c0_57 = arith.constant 0 : index
    %98 = vector.load %arg10[%c0_56, %c0_57] : memref<100x3xf32, #tpu.memory_space<vmem>>, vector<100x3xf32>
    %cst_58 = arith.constant dense<0.000000e+00> : vector<2x3xf32>
    %99 = tpu.matmul %97, %98, %cst_58 {dimension_numbers = #tpu.dot_dimension_numbers<[1], [0], [0], [1], [0, 0, 1, 1], [], []>} : vector<2x100xf32>, vector<100x3xf32>, vector<2x3xf32> -> vector<2x3xf32>
    %c0_59 = arith.constant 0 : index
    %c0_60 = arith.constant 0 : index
    %100 = vector.load %arg11[%c0_59, %c0_60] : memref<1x3xf32, #tpu.memory_space<vmem>>, vector<1x3xf32>
    %101 = vector.broadcast %100 : vector<1x3xf32> to vector<2x3xf32>
    %102 = arith.addf %99, %101 : vector<2x3xf32>
    %cst_61 = arith.constant dense<0xFF800000> : vector<2xf32>
    %103 = vector.multi_reduction <maximumf>, %102, %cst_61 [1] : vector<2x3xf32> to vector<2xf32>
    %104 = vector.shape_cast %103 : vector<2xf32> to vector<2x1xf32>
    %105 = vector.broadcast %104 : vector<2x1xf32> to vector<2x3xf32>
    %106 = arith.subf %102, %105 : vector<2x3xf32>
    %107 = math.exp %106 : vector<2x3xf32>
    %cst_62 = arith.constant dense<0.000000e+00> : vector<2xf32>
    %108 = vector.multi_reduction <add>, %107, %cst_62 [1] : vector<2x3xf32> to vector<2xf32>
    %109 = vector.shape_cast %108 : vector<2xf32> to vector<2x1xf32>
    %110 = vector.broadcast %109 : vector<2x1xf32> to vector<2x3xf32>
    %111 = arith.divf %107, %110 : vector<2x3xf32>
    %c0_63 = arith.constant 0 : index
    %c0_64 = arith.constant 0 : index
    %112 = vector.load %arg12[%c0_63, %c0_64] : memref<2x3xf32, #tpu.memory_space<vmem>>, vector<2x3xf32>
    tpu.vector_store %arg12[%c0_63, %c0_64], %111 {strides = array<i32>} : memref<2x3xf32, #tpu.memory_space<vmem>>, vector<2x3xf32>,
    return
  }
}

</mosaic_0001>

<bundles_post_ra>
// kernel: forward.2
= control target key start
LH: loop header
LB: loop body
LE: loop exit
PB: predicated region body
PF: predicated region fallthrough
CT: control target
= control target key end

     0   :  { %v1147_v0 = vmov 0.0|0.0   ;;  %vm1148_vm0 = vmmov 0   ;;  %v1149_v4 = vmov 0.0   ;;  %s1150_s22 = smov 64   ;;  %s1151_s23 = smov 96   ;;  %vm133_vm1 = vcmask 254976   ;;  %s1346_s1 = inlined_call_operand.vmem [shape: f32[32,96], index: 1, kind: input, shape index: {}]   ;;  %s1347_s2 = inlined_call_operand.vmem [shape: f32[1,32], index: 2, kind: input, shape index: {}]   ;;  %s1348_s0 = inlined_call_operand.vmem [shape: f32[8,2,96], index: 0, kind: input, shape index: {}]   ;;  %s1349_s3 = inlined_call_operand.vmem [shape: f32[8,2,32], index: 3, kind: output, shape index: {}]  }
   0x1   :  { %1046 = vmatprep.subr.bf16.mxu0 %v1147_v0  ;;  %v14_v1 = vld [vmem:[%s1346_s1] sm:$0xff]  ;;  %v15_v2 = vld [vmem:[%s1346_s1 + $0x8] sm:$0xff]  ;;  %v16_v3 = vld [vmem:[%s1346_s1 + $0x10] sm:$0xff]  ;;  %966 = vmatprep.mubr.msk.f32.mxu0 %vm1148_vm0, %v1149_v4  ;;  %vm24_vm2 = vcmask 261120  }
   0x2   :  { %v1184_v5 = vpack.c.bf16 %v15_v2, %v14_v1  ;;  %v17_v6 = vld [vmem:[%s1346_s1 + $0x18] sm:$0xff]  ;;  %v888_v7 = vld [vmem:[%s1347_s2] ss:$0 sm:$0xff]  ;;  %1052 = vmatprep.subr.bf16.mxu1 %v1147_v0  ;;  %977 = vmatprep.mubr.msk.f32.mxu1 %vm1148_vm0, %v1149_v4  ;;  %v891_v33 = vld [vmem:[%s1348_s0 + $0x2] sm:$0x3] }
   0x3   :  { %106 = vrot.lane.b32.xlu0 %v888_v7, %s1150_s22  ;;  %v1197_v8 = vpack.c.bf16 %v17_v6, %v16_v3  ;;  %v98_v13 = vld [vmem:[%s1348_s0] sm:$0x3]  ;;  %v895_v53 = vld [vmem:[%s1348_s0 + $0x4] sm:$0x3] }
   0x4   :  { %1048 = vmatpush3.bf16.msra.mxu0 %v1184_v5  ;;  %1054 = vmatpush3.bf16.msra.mxu1 %v1184_v5 }
   0x5   :  { %1049 = vmatprep.subr.bf16.mxu0 %v1147_v0  ;;  %1055 = vmatprep.subr.bf16.mxu1 %v1147_v0 }
   0x8   :  { %1051 = vmatpush3.bf16.msra.mxu0 %v1197_v8  ;;  %1057 = vmatpush3.bf16.msra.mxu1 %v1197_v8 }
   0x9   :  { %1058 = vmatprep.subr.bf16.mxu0 %v1147_v0  ;;  %1064 = vmatprep.subr.bf16.mxu1 %v1147_v0 }
   0xb   :  { %967 = vmatmul.mubr.f32.vlgmr.msra.gmra.mrb[0].mxu0 %v1149_v4 }
   0xc   :  { %1060 = vmatpush3.bf16.msra.mxu0 %v1184_v5  ;;  %988 = vmatprep.mubr.msk.f32.mxu0 %vm1148_vm0, %v1149_v4 }
   0xd   :  { %1061 = vmatprep.subr.bf16.mxu0 %v1147_v0 }
  0x10   :  { %1063 = vmatpush3.bf16.msra.mxu0 %v1197_v8 }
  0x11   :  { %1070 = vmatprep.subr.bf16.mxu0 %v1147_v0 }
  0x75   :  { %v1213_v9 = vpop.permute.xlu0 %106 }
  0xde   :  { %v94_v10 = vpop.f32.mrb[0].mxu0 }
  0xdf   :  { %v109_v11 = vadd.f32 %v1213_v9, %v94_v10  ;;  %v968_v12 = vpop.f32.mrb[1].mxu0  ;;  %v99_v14 = vadd.f32 %v98_v13, %v94_v10 }
  0xe1   :  { %111 = vrot.lane.b32.xlu0 %v109_v11, %s1150_s22  ;;  %v889_v15 = vmul.f32 -1.442695, %v99_v14  ;;  %v899_v14 = vld [vmem:[%s1348_s0 + $0x6] sm:$0x3] }
  0xe3   :  { %1099 = vpow2.f32 %v889_v15 }
  0xed   :  { %v1100_v16 = vpop.eup %1099 }
  0xee   :  { %v103_v17 = vadd.f32 1.0, %v1100_v16 }
  0xf0   :  { %1101 = vrcp.f32 %v103_v17 }
  0xfa   :  { %v1102_v18 = vpop.eup %1101 }
  0xfb   :  { %v121_v24 = vsub.f32 1.0, %v1102_v18  ;;  %v127_v26 = vmul.f32 0.0, %v1102_v18 }
 0x153   :  { %v112_v19 = vpop.permute.xlu0 %111 }
 0x154   :  { %v114_v20 = vmul.f32 %v1102_v18, %v112_v19 }
 0x156   :  { %116 = vrot.lane.b32.xlu1 %v114_v20, %s1150_s22 }
 0x1c8   :  { %v117_v21 = vpop.permute.xlu1 %116 }
 0x1c9   :  { %v119_v22 = vadd.f32 %v117_v21, %v98_v13 }
 0x1cb   :  { %1103 = vtanh.f32 %v119_v22 }
 0x1d5   :  { %v1104_v23 = vpop.eup %1103 }
 0x1d6   :  { %123 = vrot.lane.b32.xlu1 %v1104_v23, %s1151_s23 }
 0x248   :  { %v124_v25 = vpop.permute.xlu1 %123 }
 0x249   :  { %v126_v27 = vmul.f32 %v124_v25, %v121_v24 }
 0x24b   :  { %v128_v28 = vadd.f32 %v127_v26, %v126_v27 }
 0x24d   :  { %130 = vrot.lane.b32.xlu0 %v128_v28, %s1151_s23 }
 0x2bf   :  { %v131_v29 = vpop.permute.xlu0 %130 }
 0x2c0   :  { %134 = vst.msk [vmem:[%s1349_s3] sm:$0x3] %vm133_vm1, %v131_v29  ;;  %978 = vmatmul.mubr.msk.f32.vlgmr.msra.gmra.mrb[0].mxu1 %vm24_vm2, %v131_v29 }
 0x2c1   :  { %1066 = vmatpush3.bf16.msra.mxu1 %v1184_v5  ;;  %999 = vmatprep.mubr.msk.f32.mxu1 %vm1148_vm0, %v1149_v4 }
 0x2c2   :  { %1067 = vmatprep.subr.bf16.mxu1 %v1147_v0 }
 0x2c5   :  { %1069 = vmatpush3.bf16.msra.mxu1 %v1197_v8 }
 0x2c6   :  { %1076 = vmatprep.subr.bf16.mxu1 %v1147_v0 }
 0x393   :  { %v203_v30 = vpop.f32.mrb[0].mxu1 }
 0x394   :  { %v216_v31 = vadd.f32 %v203_v30, %v1213_v9  ;;  %v979_v32 = vpop.f32.mrb[1].mxu1  ;;  %v209_v34 = vadd.f32 %v891_v33, %v203_v30 }
 0x396   :  { %218 = vrot.lane.b32.xlu1 %v216_v31, %s1150_s22  ;;  %v892_v35 = vmul.f32 -1.442695, %v209_v34  ;;  %v903_v34 = vld [vmem:[%s1348_s0 + $0x8] sm:$0x3] }
 0x398   :  { %1105 = vpow2.f32 %v892_v35 }
 0x3a2   :  { %v1106_v36 = vpop.eup %1105 }
 0x3a3   :  { %v213_v37 = vadd.f32 1.0, %v1106_v36 }
 0x3a5   :  { %1107 = vrcp.f32 %v213_v37 }
 0x3af   :  { %v1108_v38 = vpop.eup %1107 }
 0x3b0   :  { %v228_v44 = vsub.f32 1.0, %v1108_v38  ;;  %v234_v46 = vmul.f32 %v1108_v38, %v128_v28 }
 0x408   :  { %v219_v39 = vpop.permute.xlu1 %218 }
 0x409   :  { %v221_v40 = vmul.f32 %v1108_v38, %v219_v39 }
 0x40b   :  { %223 = vrot.lane.b32.xlu0 %v221_v40, %s1150_s22 }
 0x47d   :  { %v224_v41 = vpop.permute.xlu0 %223 }
 0x47e   :  { %v226_v42 = vadd.f32 %v891_v33, %v224_v41 }
 0x480   :  { %1109 = vtanh.f32 %v226_v42 }
 0x48a   :  { %v1110_v43 = vpop.eup %1109 }
 0x48b   :  { %230 = vrot.lane.b32.xlu1 %v1110_v43, %s1151_s23 }
 0x4fd   :  { %v231_v45 = vpop.permute.xlu1 %230 }
 0x4fe   :  { %v233_v47 = vmul.f32 %v231_v45, %v228_v44 }
 0x500   :  { %v235_v48 = vadd.f32 %v234_v46, %v233_v47 }
 0x502   :  { %237 = vrot.lane.b32.xlu0 %v235_v48, %s1151_s23 }
 0x574   :  { %v238_v49 = vpop.permute.xlu0 %237 }
 0x575   :  { %893 = vst.msk [vmem:[%s1349_s3 + $0x2] sm:$0x3] %vm133_vm1, %v238_v49  ;;  %989 = vmatmul.mubr.msk.f32.vlgmr.msra.gmra.mrb[2].mxu0 %vm24_vm2, %v238_v49 }
 0x576   :  { %1072 = vmatpush3.bf16.msra.mxu0 %v1184_v5  ;;  %1010 = vmatprep.mubr.msk.f32.mxu0 %vm1148_vm0, %v1149_v4 }
 0x577   :  { %1073 = vmatprep.subr.bf16.mxu0 %v1147_v0 }
 0x57a   :  { %1075 = vmatpush3.bf16.msra.mxu0 %v1197_v8 }
 0x57b   :  { %1082 = vmatprep.subr.bf16.mxu0 %v1147_v0 }
 0x648   :  { %v310_v50 = vpop.f32.mrb[2].mxu0 }
 0x649   :  { %v323_v51 = vadd.f32 %v310_v50, %v1213_v9  ;;  %v990_v52 = vpop.f32.mrb[3].mxu0  ;;  %v316_v54 = vadd.f32 %v895_v53, %v310_v50 }
 0x64b   :  { %325 = vrot.lane.b32.xlu1 %v323_v51, %s1150_s22  ;;  %v896_v55 = vmul.f32 -1.442695, %v316_v54  ;;  %v907_v54 = vld [vmem:[%s1348_s0 + $0xa] sm:$0x3] }
 0x64d   :  { %1111 = vpow2.f32 %v896_v55 }
 0x657   :  { %v1112_v56 = vpop.eup %1111 }
 0x658   :  { %v320_v57 = vadd.f32 1.0, %v1112_v56 }
 0x65a   :  { %1113 = vrcp.f32 %v320_v57 }
 0x664   :  { %v1114_v58 = vpop.eup %1113 }
 0x665   :  { %v335_v1 = vsub.f32 1.0, %v1114_v58  ;;  %v341_v3 = vmul.f32 %v1114_v58, %v235_v48 }
 0x6bd   :  { %v326_v59 = vpop.permute.xlu1 %325 }
 0x6be   :  { %v328_v60 = vmul.f32 %v1114_v58, %v326_v59 }
 0x6c0   :  { %330 = vrot.lane.b32.xlu0 %v328_v60, %s1150_s22 }
 0x732   :  { %v331_v61 = vpop.permute.xlu0 %330 }
 0x733   :  { %v333_v62 = vadd.f32 %v895_v53, %v331_v61 }
 0x735   :  { %1115 = vtanh.f32 %v333_v62 }
 0x73f   :  { %v1116_v63 = vpop.eup %1115 }
 0x740   :  { %337 = vrot.lane.b32.xlu1 %v1116_v63, %s1151_s23 }
 0x7b2   :  { %v338_v2 = vpop.permute.xlu1 %337 }
 0x7b3   :  { %v340_v6 = vmul.f32 %v338_v2, %v335_v1 }
 0x7b5   :  { %v342_v7 = vadd.f32 %v341_v3, %v340_v6 }
 0x7b7   :  { %344 = vrot.lane.b32.xlu0 %v342_v7, %s1151_s23 }
 0x829   :  { %v345_v10 = vpop.permute.xlu0 %344 }
 0x82a   :  { %897 = vst.msk [vmem:[%s1349_s3 + $0x4] sm:$0x3] %vm133_vm1, %v345_v10  ;;  %1000 = vmatmul.mubr.msk.f32.vlgmr.msra.gmra.mrb[2].mxu1 %vm24_vm2, %v345_v10 }
 0x82b   :  { %1078 = vmatpush3.bf16.msra.mxu1 %v1184_v5  ;;  %1021 = vmatprep.mubr.msk.f32.mxu1 %vm1148_vm0, %v1149_v4 }
 0x82c   :  { %1079 = vmatprep.subr.bf16.mxu1 %v1147_v0 }
 0x82f   :  { %1081 = vmatpush3.bf16.msra.mxu1 %v1197_v8 }
 0x830   :  { %1088 = vmatprep.subr.bf16.mxu1 %v1147_v0 }
 0x8fd   :  { %v417_v11 = vpop.f32.mrb[2].mxu1 }
 0x8fe   :  { %v430_v12 = vadd.f32 %v417_v11, %v1213_v9  ;;  %v1001_v13 = vpop.f32.mrb[3].mxu1  ;;  %v423_v15 = vadd.f32 %v899_v14, %v417_v11  ;;  %v911_v11 = vld [vmem:[%s1348_s0 + $0xc] sm:$0x3] }
 0x900   :  { %432 = vrot.lane.b32.xlu1 %v430_v12, %s1150_s22  ;;  %v900_v16 = vmul.f32 -1.442695, %v423_v15 }
 0x902   :  { %1117 = vpow2.f32 %v900_v16 }
 0x90c   :  { %v1118_v17 = vpop.eup %1117 }
 0x90d   :  { %v427_v18 = vadd.f32 1.0, %v1118_v17 }
 0x90f   :  { %1119 = vrcp.f32 %v427_v18 }
 0x919   :  { %v1120_v19 = vpop.eup %1119 }
 0x91a   :  { %v442_v25 = vsub.f32 1.0, %v1120_v19  ;;  %v448_v27 = vmul.f32 %v1120_v19, %v342_v7 }
 0x972   :  { %v433_v20 = vpop.permute.xlu1 %432 }
 0x973   :  { %v435_v21 = vmul.f32 %v1120_v19, %v433_v20 }
 0x975   :  { %437 = vrot.lane.b32.xlu0 %v435_v21, %s1150_s22 }
 0x9e7   :  { %v438_v22 = vpop.permute.xlu0 %437 }
 0x9e8   :  { %v440_v23 = vadd.f32 %v899_v14, %v438_v22 }
 0x9ea   :  { %1121 = vtanh.f32 %v440_v23 }
 0x9f4   :  { %v1122_v24 = vpop.eup %1121 }
 0x9f5   :  { %444 = vrot.lane.b32.xlu1 %v1122_v24, %s1151_s23 }
 0xa67   :  { %v445_v26 = vpop.permute.xlu1 %444 }
 0xa68   :  { %v447_v28 = vmul.f32 %v445_v26, %v442_v25 }
 0xa6a   :  { %v449_v29 = vadd.f32 %v448_v27, %v447_v28 }
 0xa6c   :  { %451 = vrot.lane.b32.xlu0 %v449_v29, %s1151_s23 }
 0xade   :  { %v452_v30 = vpop.permute.xlu0 %451 }
 0xadf   :  { %901 = vst.msk [vmem:[%s1349_s3 + $0x6] sm:$0x3] %vm133_vm1, %v452_v30  ;;  %1011 = vmatmul.mubr.msk.f32.vlgmr.msra.gmra.mrb[4].mxu0 %vm24_vm2, %v452_v30 }
 0xae0   :  { %1084 = vmatpush3.bf16.msra.mxu0 %v1184_v5  ;;  %1032 = vmatprep.mubr.msk.f32.mxu0 %vm1148_vm0, %v1149_v4 }
 0xae1   :  { %1085 = vmatprep.subr.bf16.mxu0 %v1147_v0 }
 0xae4   :  { %1087 = vmatpush3.bf16.msra.mxu0 %v1197_v8 }
 0xbb2   :  { %v524_v31 = vpop.f32.mrb[4].mxu0 }
 0xbb3   :  { %v537_v32 = vadd.f32 %v524_v31, %v1213_v9  ;;  %v1012_v33 = vpop.f32.mrb[5].mxu0  ;;  %v530_v35 = vadd.f32 %v903_v34, %v524_v31  ;;  %v915_v31 = vld [vmem:[%s1348_s0 + $0xe] sm:$0x3] }
 0xbb5   :  { %539 = vrot.lane.b32.xlu1 %v537_v32, %s1150_s22  ;;  %v904_v36 = vmul.f32 -1.442695, %v530_v35 }
 0xbb7   :  { %1123 = vpow2.f32 %v904_v36 }
 0xbc1   :  { %v1124_v37 = vpop.eup %1123 }
 0xbc2   :  { %v534_v38 = vadd.f32 1.0, %v1124_v37 }
 0xbc4   :  { %1125 = vrcp.f32 %v534_v38 }
 0xbce   :  { %v1126_v39 = vpop.eup %1125 }
 0xbcf   :  { %v549_v45 = vsub.f32 1.0, %v1126_v39  ;;  %v555_v47 = vmul.f32 %v1126_v39, %v449_v29 }
 0xc27   :  { %v540_v40 = vpop.permute.xlu1 %539 }
 0xc28   :  { %v542_v41 = vmul.f32 %v1126_v39, %v540_v40 }
 0xc2a   :  { %544 = vrot.lane.b32.xlu0 %v542_v41, %s1150_s22 }
 0xc9c   :  { %v545_v42 = vpop.permute.xlu0 %544 }
 0xc9d   :  { %v547_v43 = vadd.f32 %v903_v34, %v545_v42 }
 0xc9f   :  { %1127 = vtanh.f32 %v547_v43 }
 0xca9   :  { %v1128_v44 = vpop.eup %1127 }
 0xcaa   :  { %551 = vrot.lane.b32.xlu1 %v1128_v44, %s1151_s23 }
 0xd1c   :  { %v552_v46 = vpop.permute.xlu1 %551 }
 0xd1d   :  { %v554_v48 = vmul.f32 %v552_v46, %v549_v45 }
 0xd1f   :  { %v556_v49 = vadd.f32 %v555_v47, %v554_v48 }
 0xd21   :  { %558 = vrot.lane.b32.xlu0 %v556_v49, %s1151_s23 }
 0xd93   :  { %v559_v50 = vpop.permute.xlu0 %558 }
 0xd94   :  { %905 = vst.msk [vmem:[%s1349_s3 + $0x8] sm:$0x3] %vm133_vm1, %v559_v50  ;;  %1022 = vmatmul.mubr.msk.f32.vlgmr.msra.gmra.mrb[4].mxu1 %vm24_vm2, %v559_v50 }
 0xd95   :  { %1090 = vmatpush3.bf16.msra.mxu1 %v1184_v5  ;;  %1043 = vmatprep.mubr.msk.f32.mxu1 %vm1148_vm0, %v1149_v4 }
 0xd96   :  { %1091 = vmatprep.subr.bf16.mxu1 %v1147_v0 }
 0xd99   :  { %1093 = vmatpush3.bf16.msra.mxu1 %v1197_v8 }
 0xe67   :  { %v631_v51 = vpop.f32.mrb[4].mxu1 }
 0xe68   :  { %v644_v52 = vadd.f32 %v631_v51, %v1213_v9  ;;  %v1023_v53 = vpop.f32.mrb[5].mxu1  ;;  %v637_v55 = vadd.f32 %v907_v54, %v631_v51 }
 0xe6a   :  { %646 = vrot.lane.b32.xlu1 %v644_v52, %s1150_s22  ;;  %v908_v56 = vmul.f32 -1.442695, %v637_v55 }
 0xe6c   :  { %1129 = vpow2.f32 %v908_v56 }
 0xe76   :  { %v1130_v5 = vpop.eup %1129 }
 0xe77   :  { %v641_v57 = vadd.f32 1.0, %v1130_v5 }
 0xe79   :  { %1131 = vrcp.f32 %v641_v57 }
 0xe83   :  { %v1132_v4 = vpop.eup %1131 }
 0xe84   :  { %v656_v61 = vsub.f32 1.0, %v1132_v4  ;;  %v662_v63 = vmul.f32 %v1132_v4, %v556_v49 }
 0xedc   :  { %v647_v0 = vpop.permute.xlu1 %646 }
 0xedd   :  { %v649_v58 = vmul.f32 %v1132_v4, %v647_v0 }
 0xedf   :  { %651 = vrot.lane.b32.xlu0 %v649_v58, %s1150_s22 }
 0xf51   :  { %v652_v8 = vpop.permute.xlu0 %651 }
 0xf52   :  { %v654_v59 = vadd.f32 %v907_v54, %v652_v8 }
 0xf54   :  { %1133 = vtanh.f32 %v654_v59 }
 0xf5e   :  { %v1134_v60 = vpop.eup %1133 }
 0xf5f   :  { %658 = vrot.lane.b32.xlu1 %v1134_v60, %s1151_s23 }
 0xfd1   :  { %v659_v62 = vpop.permute.xlu1 %658 }
 0xfd2   :  { %v661_v1 = vmul.f32 %v659_v62, %v656_v61 }
 0xfd4   :  { %v663_v2 = vadd.f32 %v662_v63, %v661_v1 }
 0xfd6   :  { %665 = vrot.lane.b32.xlu0 %v663_v2, %s1151_s23 }
0x1048   :  { %v666_v3 = vpop.permute.xlu0 %665 }
0x1049   :  { %909 = vst.msk [vmem:[%s1349_s3 + $0xa] sm:$0x3] %vm133_vm1, %v666_v3  ;;  %1033 = vmatmul.mubr.msk.f32.vlgmr.msra.gmra.mrb[6].mxu0 %vm24_vm2, %v666_v3 }
0x111c   :  { %v738_v6 = vpop.f32.mrb[6].mxu0 }
0x111d   :  { %v751_v7 = vadd.f32 %v738_v6, %v1213_v9  ;;  %v1034_v10 = vpop.f32.mrb[7].mxu0  ;;  %v744_v12 = vadd.f32 %v911_v11, %v738_v6 }
0x111f   :  { %753 = vrot.lane.b32.xlu1 %v751_v7, %s1150_s22  ;;  %v912_v13 = vmul.f32 -1.442695, %v744_v12 }
0x1121   :  { %1135 = vpow2.f32 %v912_v13 }
0x112b   :  { %v1136_v14 = vpop.eup %1135 }
0x112c   :  { %v748_v15 = vadd.f32 1.0, %v1136_v14 }
0x112e   :  { %1137 = vrcp.f32 %v748_v15 }
0x1138   :  { %v1138_v16 = vpop.eup %1137 }
0x1139   :  { %v763_v22 = vsub.f32 1.0, %v1138_v16  ;;  %v769_v24 = vmul.f32 %v1138_v16, %v663_v2 }
0x1191   :  { %v754_v17 = vpop.permute.xlu1 %753 }
0x1192   :  { %v756_v18 = vmul.f32 %v1138_v16, %v754_v17 }
0x1194   :  { %758 = vrot.lane.b32.xlu0 %v756_v18, %s1150_s22 }
0x1206   :  { %v759_v19 = vpop.permute.xlu0 %758 }
0x1207   :  { %v761_v20 = vadd.f32 %v911_v11, %v759_v19 }
0x1209   :  { %1139 = vtanh.f32 %v761_v20 }
0x1213   :  { %v1140_v21 = vpop.eup %1139 }
0x1214   :  { %765 = vrot.lane.b32.xlu1 %v1140_v21, %s1151_s23 }
0x1286   :  { %v766_v23 = vpop.permute.xlu1 %765 }
0x1287   :  { %v768_v25 = vmul.f32 %v766_v23, %v763_v22 }
0x1289   :  { %v770_v26 = vadd.f32 %v769_v24, %v768_v25 }
0x128b   :  { %772 = vrot.lane.b32.xlu0 %v770_v26, %s1151_s23 }
0x12fd   :  { %v773_v27 = vpop.permute.xlu0 %772 }
0x12fe   :  { %913 = vst.msk [vmem:[%s1349_s3 + $0xc] sm:$0x3] %vm133_vm1, %v773_v27  ;;  %1044 = vmatmul.mubr.msk.f32.vlgmr.msra.gmra.mrb[6].mxu1 %vm24_vm2, %v773_v27 }
0x13d1   :  { %v845_v28 = vpop.f32.mrb[6].mxu1 }
0x13d2   :  { %v858_v29 = vadd.f32 %v845_v28, %v1213_v9  ;;  %v1045_v30 = vpop.f32.mrb[7].mxu1  ;;  %v851_v32 = vadd.f32 %v915_v31, %v845_v28 }
0x13d4   :  { %860 = vrot.lane.b32.xlu1 %v858_v29, %s1150_s22  ;;  %v916_v33 = vmul.f32 -1.442695, %v851_v32 }
0x13d6   :  { %1141 = vpow2.f32 %v916_v33 }
0x13e0   :  { %v1142_v34 = vpop.eup %1141 }
0x13e1   :  { %v855_v35 = vadd.f32 1.0, %v1142_v34 }
0x13e3   :  { %1143 = vrcp.f32 %v855_v35 }
0x13ed   :  { %v1144_v36 = vpop.eup %1143 }
0x13ee   :  { %v870_v41 = vsub.f32 1.0, %v1144_v36  ;;  %v876_v43 = vmul.f32 %v1144_v36, %v770_v26 }
0x1446   :  { %v861_v37 = vpop.permute.xlu1 %860 }
0x1447   :  { %v863_v38 = vmul.f32 %v1144_v36, %v861_v37 }
0x1449   :  { %865 = vrot.lane.b32.xlu0 %v863_v38, %s1150_s22 }
0x14bb   :  { %v866_v39 = vpop.permute.xlu0 %865 }
0x14bc   :  { %v868_v9 = vadd.f32 %v915_v31, %v866_v39 }
0x14be   :  { %1145 = vtanh.f32 %v868_v9 }
0x14c8   :  { %v1146_v40 = vpop.eup %1145 }
0x14c9   :  { %872 = vrot.lane.b32.xlu1 %v1146_v40, %s1151_s23 }
0x153b   :  { %v873_v42 = vpop.permute.xlu1 %872 }
0x153c   :  { %v875_v44 = vmul.f32 %v873_v42, %v870_v41 }
0x153e   :  { %v877_v45 = vadd.f32 %v876_v43, %v875_v44 }
0x1540   :  { %879 = vrot.lane.b32.xlu0 %v877_v45, %s1151_s23 }
0x15b2   :  { %v880_v46 = vpop.permute.xlu0 %879 }
0x15b3   :  { %917 = vst.msk [vmem:[%s1349_s3 + $0xe] sm:$0x3] %vm133_vm1, %v880_v46 }

// kernel: forward.3
= control target key start
LH: loop header
LB: loop body
LE: loop exit
PB: predicated region body
PF: predicated region fallthrough
CT: control target
= control target key end

     0   :  { %vm55_vm0 = vcmask 261120   ;;  %s3107_s0 = inlined_call_operand.vmem [shape: f32[16,32], index: 0, kind: input, shape index: {}]   ;;  %s3108_s1 = inlined_call_operand.vmem [shape: f32[16,4,32], index: 1, kind: input, shape index: {}]   ;;  %s3109_s2 = inlined_call_operand.vmem [shape: f32[32,32], index: 2, kind: input, shape index: {}]   ;;  %s3110_s3 = inlined_call_operand.vmem [shape: f32[1,32], index: 3, kind: input, shape index: {}]   ;;  %s3111_s4 = inlined_call_operand.vmem [shape: f32[128,4], index: 4, kind: input, shape index: {}]   ;;  %s3112_s5 = inlined_call_operand.vmem [shape: f32[1,4], index: 5, kind: input, shape index: {}]   ;;  %s3113_s6 = inlined_call_operand.vmem [shape: f32[192,6], index: 6, kind: input, shape index: {}]   ;;  %s3114_s7 = inlined_call_operand.vmem [shape: f32[1,6], index: 7, kind: input, shape index: {}]   ;;  %s3115_s8 = inlined_call_operand.vmem [shape: f32[10,100], index: 8, kind: input, shape index: {}]   ;;  %s3116_s9 = inlined_call_operand.vmem [shape: f32[1,100], index: 9, kind: input, shape index: {}]   ;;  %s3117_s10 = inlined_call_operand.vmem [shape: f32[100,3], index: 10, kind: input, shape index: {}]   ;;  %s3118_s11 = inlined_call_operand.vmem [shape: f32[1,3], index: 11, kind: input, shape index: {}]   ;;  %s3119_s12 = inlined_call_operand.hbm [shape: f32[2,3], index: 12, kind: output, shape index: {}]  }
   0x1   :  { %v44_v0 = vld [vmem:[%s3109_s2] sm:$0xff]  ;;  %v45_v1 = vld [vmem:[%s3109_s2 + $0x8] sm:$0xff]  ;;  %v46_v2 = vld [vmem:[%s3109_s2 + $0x10] sm:$0xff] }
   0x2   :  { %v2138_v3 = vpack.c.bf16 %v45_v1, %v44_v0  ;;  %v47_v4 = vld [vmem:[%s3109_s2 + $0x18] sm:$0xff]  ;;  %v42_v5 = vld [vmem:[%s3107_s0] sm:$0xff]  ;;  %v43_v6 = vld [vmem:[%s3107_s0 + $0x8] sm:$0xff] }
   0x3   :  { %v2142_v7 = vpack.c.bf16 %v47_v4, %v46_v2  ;;  %2004 = vmatprep.mubr.msk.f32.mxu0 %vm55_vm0, %v42_v5  ;;  %1100 = vst.msk [vmem:[#allocation2] sm:$0xff] %vm55_vm0, %v42_v5  ;;  %1101 = vst.msk [vmem:[#allocation2 + $0x8] sm:$0xff] %vm55_vm0, %v43_v6 }
   0x4   :  { %17 = vsyncpa [#allocation4], 0  ;;  %2139 = vmatprep.subr.bf16.mxu0 %v2138_v3  ;;  %v1902_v8 = vld [vmem:[%s3110_s3] ss:$0 sm:$0xff]  ;;  %v2335_v13 = vmov 1966171168   ;;  %v161_v15 = vlaneseq }
   0x5   :  { %2141 = vmatpush3.bf16.msra.mxu0 %v2138_v3  ;;  %v159_v14 = vunpack.c.l.s4 %v2335_v13  ;;  %v2445_v28 = vld [vmem:[%s3108_s1 + $0x20] sm:$0xf]  ;;  %vm351_vm1 = vcmask 257024   ;;  %v2461_v38 = vld [vmem:[%s3108_s1 + $0x24] sm:$0xf]  ;;  %vm482_vm2 = vcmask 1041409  }
   0x6   :  { %2143 = vmatprep.subr.bf16.mxu0 %v2142_v7  ;;  %v2431_v17 = vshrl.u32 %v161_v15, 7  ;;  %v2454_v34 = vld [vmem:[%s3108_s1] sm:$0xf]  ;;  %v2469_v43 = vld [vmem:[%s3108_s1 + $0x4] sm:$0xf]  ;;  %vm484_vm3 = vcmask 1042434  }
   0x7   :  { %v160_v16 = vunpack.c.0.s8 %v159_v14  ;;  %v2483_v53 = vld [vmem:[%s3108_s1 + $0x28] sm:$0xf]  ;;  %v2500_v0 = vld [vmem:[%s3108_s1 + $0x30] sm:$0xf]  ;;  %v2523_v13 = vld [vmem:[%s3108_s1 + $0xc] sm:$0xf] }
   0x8   :  { %v2438_v22 = vsub.s32 0, %v2431_v17  ;;  %v2489_v55 = vld [vmem:[%s3108_s1 + $0x8] sm:$0xf]  ;;  %v2505_v3 = vld [vmem:[%s3108_s1 + $0x10] sm:$0xf]  ;;  %vm486_vm4 = vcmask 1043459  }
   0x9   :  { %2145 = vmatpush3.bf16.msra.mxu0 %v2142_v7  ;;  %v2434_v18 = vsub.s32 %v160_v16, %v2431_v17  ;;  %vm488_vm5 = vcmask 1044484   ;;  %vm490_vm6 = vcmask 1045509   ;;  %vm492_vm7 = vcmask 1046534   ;;  %s2337_s19 = smov 32   ;;  %s2342_s13 = smov 4  }
   0xa   :  { %vm494_vm8 = vcmask 1047559   ;;  %vm505_vm9 = vcmask 31744   ;;  %vm1141_vm10 = vcmask 523264   ;;  %vm1138_vm11 = vcmask 523520  }
   0xb   :  { %vm1702_vm12 = vcmask 1041408   ;;  %vm2340_vm13 = vmmov 1  }
   0xc   :  { %2005 = vmatmul.mubr.msk.f32.vlgmr.msra.gmra.mrb[0].mxu0 %vm55_vm0, %v43_v6  ;;  %vm2228_vm14 = vmpackc.low %vm1702_vm12, %vm2340_vm13 }
  0xdf   :  { %v2006_v9 = vpop.f32.mrb[0].mxu0 }
  0xe0   :  { %v134_v10 = vadd.f32 %v2006_v9, %v1902_v8  ;;  %v128_v11 = vpop.f32.mrb[1].mxu0 }
  0xe1   :  { %v129_v12 = vadd.f32 %v1902_v8, %v128_v11 }
  0xe2   :  { %2265 = vtanh.f32 %v134_v10  ;;  %v2516_v10 = vld [vmem:[%s3108_s1 + $0x2c] sm:$0xf] }
  0xe3   :  { %2267 = vtanh.f32 %v129_v12 }
  0xec   :  { %v2266_v19 = vpop.eup %2265 }
  0xed   :  { %v2268_v20 = vpop.eup %2267  ;;  %v213_v21 = vrot.slane %v2266_v19, %v2434_v18  ;;  %v206_v23 = vcombine.high %v2266_v19, %v2266_v19 }
  0xee   :  { %v164_v24 = vrot.slane %v2268_v20, %v2434_v18  ;;  %v157_v25 = vcombine.high %v2268_v20, %v2268_v20 }
  0xef   :  { %v229_v26 = vrot.slane %v213_v21, %v2434_v18  ;;  %v221_v27 = vcombine.high %v213_v21, %v213_v21  ;;  %v220_v31 = vrot.slane %v206_v23, %v2434_v18 }
  0xf0   :  { %v180_v29 = vrot.slane %v164_v24, %v2434_v18  ;;  %v172_v30 = vcombine.high %v164_v24, %v164_v24  ;;  %v171_v32 = vrot.slane %v157_v25, %v2434_v18 }
  0xf1   :  { %v290_v33 = vrot.slane %v229_v26, %v2438_v22  ;;  %v243_v35 = vrot.slane %v221_v27, %v2434_v18  ;;  %v251_v36 = vcombine.high %v229_v26, %v229_v26  ;;  %v236_v46 = vrot.slane %v220_v31, %v2434_v18  ;;  %v2539_v26 = vld [vmem:[%s3108_s1 + $0x14] sm:$0xf] }
  0xf2   :  { %v258_v37 = vrot.slane %v180_v29, %v2438_v22  ;;  %v194_v39 = vrot.slane %v172_v30, %v2434_v18  ;;  %v202_v40 = vcombine.high %v180_v29, %v180_v29  ;;  %v187_v47 = vrot.slane %v171_v32, %v2434_v18 }
  0xf3   :  { %v343_v41 = vmul.f32 %v290_v33, %v2445_v28  ;;  %v294_v42 = vrot.slane %v243_v35, %v2438_v22  ;;  %v298_v50 = vrot.slane %v251_v36, %v2438_v22  ;;  %v306_v56 = vrot.slane %v236_v46, %v2438_v22 }
  0xf4   :  { %v335_v44 = vmul.f32 %v258_v37, %v2454_v34  ;;  %v262_v45 = vrot.slane %v194_v39, %v2438_v22  ;;  %v266_v54 = vrot.slane %v202_v40, %v2438_v22  ;;  %v274_v57 = vrot.slane %v187_v47, %v2438_v22 }
  0xf5   :  { %v376_v48 = vsel %vm351_vm1, %v343_v41, 0.0  ;;  %v344_v49 = vmul.f32 %v294_v42, %v2461_v38  ;;  %v345_v59 = vmul.f32 %v298_v50, %v2483_v53  ;;  %v253_v60 = vcombine.high %v243_v35, %v243_v35  ;;  %v2549_v35 = vld [vmem:[%s3108_s1 + $0x38] sm:$0xf] }
  0xf6   :  { %377 = vadd.xlane.f32.xlu1 %v376_v48  ;;  %v352_v51 = vsel %vm351_vm1, %v335_v44, 0.0  ;;  %v336_v52 = vmul.f32 %v262_v45, %v2469_v43  ;;  %v222_v61 = vcombine.high %v220_v31, %v220_v31  ;;  %v337_v63 = vmul.f32 %v266_v54, %v2489_v55  ;;  %v2571_v48 = vld [vmem:[%s3108_s1 + $0x1c] sm:$0xf] }
  0xf7   :  { %353 = vadd.xlane.f32.xlu0 %v352_v51  ;;  %v379_v58 = vsel %vm351_vm1, %v344_v49, 0.0  ;;  %v204_v1 = vcombine.high %v194_v39, %v194_v39  ;;  %v173_v2 = vcombine.high %v171_v32, %v171_v32  ;;  %v382_v4 = vsel %vm351_vm1, %v345_v59, 0.0  ;;  %v2555_v39 = vld [vmem:[%s3108_s1 + $0x18] sm:$0xf] }
  0xf8   :  { %v355_v62 = vsel %vm351_vm1, %v336_v52, 0.0  ;;  %v347_v5 = vmul.f32 %v306_v56, %v2500_v0  ;;  %v302_v6 = vrot.slane %v253_v60, %v2438_v22  ;;  %v250_v7 = vrot.slane %v222_v61, %v2434_v18 }
  0xf9   :  { %v358_v8 = vsel %vm351_vm1, %v337_v63, 0.0  ;;  %v339_v9 = vmul.f32 %v274_v57, %v2505_v3  ;;  %v270_v11 = vrot.slane %v204_v1, %v2438_v22  ;;  %v201_v12 = vrot.slane %v173_v2, %v2434_v18  ;;  %v2533_v18 = vld [vmem:[%s3108_s1 + $0x34] sm:$0xf] }
  0xfa   :  { %380 = vadd.xlane.f32.xlu1 %v379_v58  ;;  %v388_v14 = vsel %vm351_vm1, %v347_v5, 0.0  ;;  %v346_v16 = vmul.f32 %v302_v6, %v2516_v10  ;;  %v310_v19 = vrot.slane %v250_v7, %v2438_v22  ;;  %v252_v20 = vcombine.high %v236_v46, %v236_v46  ;;  %v2565_v46 = vld [vmem:[%s3108_s1 + $0x3c] sm:$0xf] }
  0xfb   :  { %356 = vadd.xlane.f32.xlu0 %v355_v62  ;;  %v364_v21 = vsel %vm351_vm1, %v339_v9, 0.0  ;;  %v338_v23 = vmul.f32 %v270_v11, %v2523_v13  ;;  %v278_v24 = vrot.slane %v201_v12, %v2438_v22  ;;  %v203_v25 = vcombine.high %v187_v47, %v187_v47 }
  0xfc   :  { %v385_v27 = vsel %vm351_vm1, %v346_v16, 0.0  ;;  %v348_v29 = vmul.f32 %v310_v19, %v2533_v18  ;;  %v314_v30 = vrot.slane %v252_v20, %v2438_v22  ;;  %v254_v31 = vcombine.high %v250_v7, %v250_v7 }
  0xfd   :  { %v361_v32 = vsel %vm351_vm1, %v338_v23, 0.0  ;;  %v340_v33 = vmul.f32 %v278_v24, %v2539_v26  ;;  %v282_v36 = vrot.slane %v203_v25, %v2438_v22  ;;  %v205_v37 = vcombine.high %v201_v12, %v201_v12 }
  0xfe   :  { %383 = vadd.xlane.f32.xlu1 %v382_v4  ;;  %v391_v40 = vsel %vm351_vm1, %v348_v29, 0.0  ;;  %v349_v41 = vmul.f32 %v314_v30, %v2549_v35  ;;  %v318_v42 = vrot.slane %v254_v31, %v2438_v22  ;;  %v417_v1 = vand.u32 127, %v161_v15 }
  0xff   :  { %359 = vadd.xlane.f32.xlu0 %v358_v8  ;;  %v367_v44 = vsel %vm351_vm1, %v340_v33, 0.0  ;;  %v341_v45 = vmul.f32 %v282_v36, %v2555_v39  ;;  %v286_v47 = vrot.slane %v205_v37, %v2438_v22 }
 0x100   :  { %v394_v49 = vsel %vm351_vm1, %v349_v41, 0.0  ;;  %v350_v50 = vmul.f32 %v318_v42, %v2565_v46  ;;  %v2599_v5 = vsub.s32 %v417_v1, %v2431_v17 }
 0x101   :  { %v370_v51 = vsel %vm351_vm1, %v341_v45, 0.0  ;;  %v342_v52 = vmul.f32 %v286_v47, %v2571_v48 }
 0x102   :  { %389 = vadd.xlane.f32.xlu1 %v388_v14  ;;  %v397_v54 = vsel %vm351_vm1, %v350_v50, 0.0 }
 0x103   :  { %365 = vadd.xlane.f32.xlu0 %v364_v21  ;;  %v373_v56 = vsel %vm351_vm1, %v342_v52, 0.0 }
 0x106   :  { %386 = vadd.xlane.f32.xlu1 %v385_v27 }
 0x107   :  { %362 = vadd.xlane.f32.xlu0 %v361_v32 }
 0x10a   :  { %392 = vadd.xlane.f32.xlu1 %v391_v40 }
 0x10b   :  { %368 = vadd.xlane.f32.xlu0 %v367_v44 }
 0x10e   :  { %395 = vadd.xlane.f32.xlu1 %v394_v49 }
 0x10f   :  { %371 = vadd.xlane.f32.xlu0 %v370_v51 }
 0x112   :  { %398 = vadd.xlane.f32.xlu1 %v397_v54 }
 0x113   :  { %374 = vadd.xlane.f32.xlu0 %v373_v56 }
 0x183   :  { %v2579_v57 = vpop.xlane.xlu1 %377 }
 0x184   :  { %v2581_v58 = vpop.xlane.xlu0 %353  ;;  %v453_v11 = vrot.slane %v2579_v57, %v2599_v5 }
 0x185   :  { %v421_v19 = vrot.slane %v2581_v58, %v2599_v5 }
 0x187   :  { %v2583_v59 = vpop.xlane.xlu1 %380 }
 0x188   :  { %v2585_v60 = vpop.xlane.xlu0 %356  ;;  %v457_v7 = vrot.slane %v2583_v59, %v2599_v5 }
 0x189   :  { %v425_v8 = vrot.slane %v2585_v60, %v2599_v5 }
 0x18a   :  { %v496_v21 = vsel %vm482_vm2, %v457_v7, %v453_v11  ;;  %v2336_v11 = vmov 0  }
 0x18b   :  { %v2587_v61 = vpop.xlane.xlu1 %383  ;;  %v483_v23 = vsel %vm482_vm2, %v425_v8, %v421_v19  ;;  %2264 = vset.pattern.permute.xlu0 %v2336_v11  ;;  %2263 = vset.pattern.permute.xlu1 %v2336_v11  ;;  %v2670_v19 = vsub.s32 4, %v2431_v17 }
 0x18c   :  { %v2589_v62 = vpop.xlane.xlu0 %359  ;;  %v461_v9 = vrot.slane %v2587_v61, %v2599_v5 }
 0x18d   :  { %v429_v12 = vrot.slane %v2589_v62, %v2599_v5 }
 0x18e   :  { %v497_v24 = vsel %vm484_vm3, %v461_v9, %v496_v21 }
 0x18f   :  { %v2591_v63 = vpop.xlane.xlu1 %389  ;;  %v485_v27 = vsel %vm484_vm3, %v429_v12, %v483_v23  ;;  %v2664_v12 = vsub.s32 1, %v2431_v17 }
 0x190   :  { %v2594_v2 = vpop.xlane.xlu0 %365  ;;  %v469_v32 = vrot.slane %v2591_v63, %v2599_v5 }
 0x191   :  { %v437_v40 = vrot.slane %v2594_v2, %v2599_v5 }
 0x193   :  { %v2596_v4 = vpop.xlane.xlu1 %386 }
 0x194   :  { %v2601_v6 = vpop.xlane.xlu0 %362  ;;  %v465_v14 = vrot.slane %v2596_v4, %v2599_v5 }
 0x195   :  { %v433_v20 = vrot.slane %v2601_v6, %v2599_v5 }
 0x196   :  { %v498_v29 = vsel %vm486_vm4, %v465_v14, %v497_v24  ;;  %v2667_v14 = vsub.s32 2, %v2431_v17 }
 0x197   :  { %v2609_v15 = vpop.xlane.xlu1 %392  ;;  %v487_v33 = vsel %vm486_vm4, %v433_v20, %v485_v27  ;;  %v499_v44 = vsel %vm488_vm5, %v469_v32, %v498_v29  ;;  %v2673_v20 = vsub.s32 5, %v2431_v17  ;;  %v2678_v27 = vsub.s32 3, %v2431_v17 }
 0x198   :  { %v2617_v16 = vpop.xlane.xlu0 %368  ;;  %v473_v30 = vrot.slane %v2609_v15, %v2599_v5  ;;  %v489_v50 = vsel %vm488_vm5, %v437_v40, %v487_v33 }
 0x199   :  { %v441_v36 = vrot.slane %v2617_v16, %v2599_v5 }
 0x19a   :  { %v500_v49 = vsel %vm490_vm6, %v473_v30, %v499_v44  ;;  %v2689_v44 = vsub.s32 6, %v2431_v17 }
 0x19b   :  { %v2626_v25 = vpop.xlane.xlu1 %395  ;;  %v491_v54 = vsel %vm490_vm6, %v441_v36, %v489_v50 }
 0x19c   :  { %v2632_v31 = vpop.xlane.xlu0 %371  ;;  %v477_v37 = vrot.slane %v2626_v25, %v2599_v5 }
 0x19d   :  { %v445_v41 = vrot.slane %v2632_v31, %v2599_v5 }
 0x19e   :  { %v501_v52 = vsel %vm492_vm7, %v477_v37, %v500_v49 }
 0x19f   :  { %v2645_v42 = vpop.xlane.xlu1 %398  ;;  %v493_v1 = vsel %vm492_vm7, %v445_v41, %v491_v54 }
 0x1a0   :  { %v481_v45 = vrot.slane %v2645_v42, %v2599_v5  ;;  %v2650_v47 = vpop.xlane.xlu0 %374 }
 0x1a1   :  { %v449_v51 = vrot.slane %v2650_v47, %v2599_v5 }
 0x1a2   :  { %v502_v56 = vsel %vm494_vm8, %v481_v45, %v501_v52 }
 0x1a3   :  { %v509_v7 = vsel %vm505_vm9, %v502_v56, -inf  ;;  %v495_v8 = vsel %vm494_vm8, %v449_v51, %v493_v1 }
 0x1a4   :  { %510 = vmax.xlane.f32.xlu1 %v509_v7  ;;  %v506_v9 = vsel %vm505_vm9, %v495_v8, -inf }
 0x1a5   :  { %507 = vmax.xlane.f32.xlu0 %v506_v9 }
 0x231   :  { %v511_v21 = vpop.xlane.xlu1 %510 }
 0x232   :  { %v549_v23 = vrot.slane %v511_v21, %v2438_v22  ;;  %v553_v24 = vrot.slane %v511_v21, %v2664_v12  ;;  %v557_v29 = vrot.slane %v511_v21, %v2667_v14  ;;  %v565_v30 = vrot.slane %v511_v21, %v2670_v19  ;;  %v2686_v40 = vpop.xlane.xlu0 %507 }
 0x233   :  { %v569_v32 = vrot.slane %v511_v21, %v2673_v20  ;;  %v561_v45 = vrot.slane %v511_v21, %v2678_v27  ;;  %v525_v11 = vrot.slane %v2686_v40, %v2667_v14 }
 0x234   :  { %v602_v33 = vsub.f32 %v2579_v57, %v549_v23  ;;  %v603_v36 = vsub.f32 %v2583_v59, %v553_v24  ;;  %v606_v37 = vsub.f32 %v2591_v63, %v565_v30  ;;  %v604_v49 = vsub.f32 %v2587_v61, %v557_v29 }
 0x235   :  { %v607_v51 = vsub.f32 %v2609_v15, %v569_v32  ;;  %v517_v57 = vrot.slane %v2686_v40, %v2438_v22  ;;  %v2697_v59 = vsub.s32 7, %v2431_v17  ;;  %v573_v63 = vrot.slane %v511_v21, %v2689_v44 }
 0x236   :  { %v626_v41 = vmul.f32 1.442695, %v602_v33  ;;  %v628_v50 = vmul.f32 1.442695, %v603_v36  ;;  %v634_v52 = vmul.f32 1.442695, %v606_v37  ;;  %v605_v54 = vsub.f32 %v2596_v4, %v561_v45 }
 0x237   :  { %v630_v56 = vmul.f32 1.442695, %v604_v49  ;;  %v636_v1 = vmul.f32 1.442695, %v607_v51  ;;  %v521_v61 = vrot.slane %v2686_v40, %v2664_v12  ;;  %v594_v15 = vsub.f32 %v2581_v58, %v517_v57 }
 0x238   :  { %2269 = vpow2.f32 %v626_v41  ;;  %v577_v7 = vrot.slane %v511_v21, %v2697_v59  ;;  %v608_v8 = vsub.f32 %v2626_v25, %v573_v63  ;;  %v632_v9 = vmul.f32 1.442695, %v605_v54 }
 0x239   :  { %2271 = vpow2.f32 %v628_v50  ;;  %v595_v4 = vsub.f32 %v2585_v60, %v521_v61  ;;  %v610_v23 = vmul.f32 1.442695, %v594_v15  ;;  %v529_v58 = vrot.slane %v2686_v40, %v2678_v27 }
 0x23a   :  { %2273 = vpow2.f32 %v634_v52  ;;  %v609_v29 = vsub.f32 %v2645_v42, %v577_v7  ;;  %v638_v30 = vmul.f32 1.442695, %v608_v8  ;;  %v596_v25 = vsub.f32 %v2589_v62, %v525_v11 }
 0x23b   :  { %2275 = vpow2.f32 %v630_v56  ;;  %v612_v21 = vmul.f32 1.442695, %v595_v4  ;;  %v533_v42 = vrot.slane %v2686_v40, %v2670_v19  ;;  %v597_v36 = vsub.f32 %v2601_v6, %v529_v58 }
 0x23c   :  { %2277 = vpow2.f32 %v636_v1  ;;  %v640_v60 = vmul.f32 1.442695, %v609_v29  ;;  %v614_v37 = vmul.f32 1.442695, %v596_v25  ;;  %v537_v45 = vrot.slane %v2686_v40, %v2673_v20 }
 0x23d   :  { %2279 = vpow2.f32 %v632_v9  ;;  %v598_v49 = vsub.f32 %v2594_v2, %v533_v42  ;;  %v616_v50 = vmul.f32 1.442695, %v597_v36  ;;  %v541_v52 = vrot.slane %v2686_v40, %v2689_v44 }
 0x23e   :  { %2281 = vpow2.f32 %v610_v23  ;;  %v599_v57 = vsub.f32 %v2617_v16, %v537_v45  ;;  %v545_v56 = vrot.slane %v2686_v40, %v2697_v59 }
 0x23f   :  { %2283 = vpow2.f32 %v638_v30  ;;  %v618_v63 = vmul.f32 1.442695, %v598_v49  ;;  %v600_v1 = vsub.f32 %v2632_v31, %v541_v52 }
 0x240   :  { %2285 = vpow2.f32 %v612_v21  ;;  %v620_v61 = vmul.f32 1.442695, %v599_v57  ;;  %v601_v7 = vsub.f32 %v2650_v47, %v545_v56 }
 0x241   :  { %2287 = vpow2.f32 %v640_v60  ;;  %v622_v8 = vmul.f32 1.442695, %v600_v1 }
 0x242   :  { %v2709_v24 = vpop.eup %2269  ;;  %2289 = vpow2.f32 %v614_v37  ;;  %v624_v31 = vmul.f32 1.442695, %v601_v7 }
 0x243   :  { %683 = vperm.xlu1 %2263, %v2709_v24   ;;  %v2716_v32 = vpop.eup %2271  ;;  %2291 = vpow2.f32 %v616_v50 }
 0x244   :  { %v2718_v33 = vpop.eup %2273  ;;  %2293 = vpow2.f32 %v618_v63 }
 0x245   :  { %695 = vperm.xlu0 %2264, %v2718_v33   ;;  %v2725_v62 = vpop.eup %2275  ;;  %2295 = vpow2.f32 %v620_v61 }
 0x246   :  { %v2727_v41 = vpop.eup %2277  ;;  %2297 = vpow2.f32 %v622_v8 }
 0x247   :  { %686 = vperm.xlu1 %2263, %v2716_v32   ;;  %v2734_v51 = vpop.eup %2279  ;;  %2299 = vpow2.f32 %v624_v31 }
 0x248   :  { %v2736_v6 = vpop.eup %2281 }
 0x249   :  { %698 = vperm.xlu0 %2264, %v2727_v41   ;;  %v2743_v54 = vpop.eup %2283 }
 0x24a   :  { %v2745_v2 = vpop.eup %2285 }
 0x24b   :  { %689 = vperm.xlu1 %2263, %v2725_v62   ;;  %v2752_v15 = vpop.eup %2287 }
 0x24c   :  { %v2754_v16 = vpop.eup %2289 }
 0x24d   :  { %659 = vperm.xlu0 %2264, %v2736_v6   ;;  %v2759_v9 = vpop.eup %2291 }
 0x24e   :  { %v2762_v40 = vpop.eup %2293 }
 0x24f   :  { %692 = vperm.xlu1 %2263, %v2734_v51   ;;  %v2765_v11 = vpop.eup %2295 }
 0x250   :  { %v2768_v4 = vpop.eup %2297 }
 0x251   :  { %701 = vperm.xlu0 %2264, %v2743_v54   ;;  %v2771_v47 = vpop.eup %2299 }
 0x253   :  { %662 = vperm.xlu1 %2263, %v2745_v2  }
 0x255   :  { %704 = vperm.xlu0 %2264, %v2752_v15  }
 0x257   :  { %665 = vperm.xlu1 %2263, %v2754_v16  }
 0x25b   :  { %668 = vperm.xlu1 %2263, %v2759_v9  }
 0x25f   :  { %671 = vperm.xlu1 %2263, %v2762_v40  }
 0x263   :  { %674 = vperm.xlu1 %2263, %v2765_v11  }
 0x267   :  { %677 = vperm.xlu1 %2263, %v2768_v4  }
 0x26b   :  { %680 = vperm.xlu1 %2263, %v2771_v47  }
 0x2c2   :  { %v684_v23 = vpop.permute.xlu1 %683 }
 0x2c3   :  { %v741_v42 = vrot.slane %v684_v23, %v2599_v5 }
 0x2c4   :  { %v696_v29 = vpop.permute.xlu0 %695 }
 0x2c5   :  { %v757_v50 = vrot.slane %v696_v29, %v2599_v5 }
 0x2c6   :  { %v687_v30 = vpop.permute.xlu1 %686 }
 0x2c7   :  { %v745_v21 = vrot.slane %v687_v30, %v2599_v5 }
 0x2c8   :  { %v699_v58 = vpop.permute.xlu0 %698 }
 0x2c9   :  { %v777_v45 = vsel %vm482_vm2, %v745_v21, %v741_v42  ;;  %v761_v57 = vrot.slane %v699_v58, %v2599_v5 }
 0x2ca   :  { %v690_v25 = vpop.permute.xlu1 %689 }
 0x2cb   :  { %v749_v60 = vrot.slane %v690_v25, %v2599_v5 }
 0x2cc   :  { %v660_v36 = vpop.permute.xlu0 %659 }
 0x2cd   :  { %v778_v52 = vsel %vm484_vm3, %v749_v60, %v777_v45 }
 0x2ce   :  { %v693_v37 = vpop.permute.xlu1 %692 }
 0x2cf   :  { %v753_v49 = vrot.slane %v693_v37, %v2599_v5 }
 0x2d0   :  { %v702_v1 = vpop.permute.xlu0 %701 }
 0x2d1   :  { %v779_v63 = vsel %vm486_vm4, %v753_v49, %v778_v52  ;;  %v765_v8 = vrot.slane %v702_v1, %v2599_v5  ;;  %v709_v49 = vrot.slane %v660_v36, %v2599_v5 }
 0x2d2   :  { %v780_v56 = vsel %vm488_vm5, %v757_v50, %v779_v63  ;;  %v663_v61 = vpop.permute.xlu1 %662 }
 0x2d3   :  { %v781_v7 = vsel %vm490_vm6, %v761_v57, %v780_v56  ;;  %v713_v37 = vrot.slane %v663_v61, %v2599_v5 }
 0x2d4   :  { %v705_v31 = vpop.permute.xlu0 %704  ;;  %v782_v30 = vsel %vm492_vm7, %v765_v8, %v781_v7 }
 0x2d5   :  { %v769_v29 = vrot.slane %v705_v31, %v2599_v5  ;;  %v770_v63 = vsel %vm482_vm2, %v713_v37, %v709_v49 }
 0x2d6   :  { %v666_v23 = vpop.permute.xlu1 %665 }
 0x2d7   :  { %v783_v25 = vsel %vm494_vm8, %v769_v29, %v782_v30  ;;  %v717_v45 = vrot.slane %v666_v23, %v2599_v5 }
 0x2d8   :  { %v789_v58 = vsel %vm505_vm9, %v783_v25, 0.0 }
 0x2d9   :  { %790 = vadd.xlane.f32.xlu0 %v789_v58  ;;  %v771_v1 = vsel %vm484_vm3, %v717_v45, %v770_v63 }
 0x2da   :  { %v669_v21 = vpop.permute.xlu1 %668 }
 0x2db   :  { %v721_v50 = vrot.slane %v669_v21, %v2599_v5 }
 0x2dd   :  { %v772_v8 = vsel %vm486_vm4, %v721_v50, %v771_v1 }
 0x2de   :  { %v672_v60 = vpop.permute.xlu1 %671 }
 0x2df   :  { %v725_v52 = vrot.slane %v672_v60, %v2599_v5 }
 0x2e1   :  { %v773_v61 = vsel %vm488_vm5, %v725_v52, %v772_v8 }
 0x2e2   :  { %v675_v42 = vpop.permute.xlu1 %674 }
 0x2e3   :  { %v729_v56 = vrot.slane %v675_v42, %v2599_v5 }
 0x2e5   :  { %v774_v36 = vsel %vm490_vm6, %v729_v56, %v773_v61 }
 0x2e6   :  { %v678_v57 = vpop.permute.xlu1 %677 }
 0x2e7   :  { %v733_v7 = vrot.slane %v678_v57, %v2599_v5 }
 0x2e9   :  { %v775_v30 = vsel %vm492_vm7, %v733_v7, %v774_v36 }
 0x2ea   :  { %v681_v31 = vpop.permute.xlu1 %680 }
 0x2eb   :  { %v737_v23 = vrot.slane %v681_v31, %v2599_v5 }
 0x2ed   :  { %v776_v29 = vsel %vm494_vm8, %v737_v23, %v775_v30 }
 0x2ee   :  { %v786_v25 = vsel %vm505_vm9, %v776_v29, 0.0 }
 0x2ef   :  { %787 = vadd.xlane.f32.xlu1 %v786_v25 }
 0x366   :  { %v791_v58 = vpop.xlane.xlu0 %790 }
 0x367   :  { %2301 = vrcp.f32 %v791_v58 }
 0x371   :  { %v2302_v21 = vpop.eup %2301 }
 0x372   :  { %v835_v60 = vrot.slane %v2302_v21, %v2664_v12  ;;  %v831_v42 = vrot.slane %v2302_v21, %v2438_v22  ;;  %v839_v5 = vrot.slane %v2302_v21, %v2667_v14  ;;  %v843_v50 = vrot.slane %v2302_v21, %v2678_v27 }
 0x373   :  { %v847_v63 = vrot.slane %v2302_v21, %v2670_v19  ;;  %v855_v61 = vrot.slane %v2302_v21, %v2689_v44  ;;  %v859_v36 = vrot.slane %v2302_v21, %v2697_v59 }
 0x374   :  { %v885_v37 = vmul.f32 %v2716_v32, %v835_v60  ;;  %v884_v45 = vmul.f32 %v2709_v24, %v831_v42  ;;  %v886_v49 = vmul.f32 %v2725_v62, %v839_v5  ;;  %v887_v57 = vmul.f32 %v2734_v51, %v843_v50 }
 0x375   :  { %v888_v32 = vmul.f32 %v2718_v33, %v847_v63  ;;  %v851_v24 = vrot.slane %v2302_v21, %v2673_v20  ;;  %v890_v33 = vmul.f32 %v2743_v54, %v855_v61 }
 0x376   :  { %939 = vperm.xlu0 %2264, %v885_v37   ;;  %934 = vperm.xlu1 %2263, %v884_v45  }
 0x377   :  { %v889_v56 = vmul.f32 %v2727_v41, %v851_v24 }
 0x37a   :  { %944 = vperm.xlu0 %2264, %v886_v49  }
 0x37c   :  { %v788_v52 = vpop.xlane.xlu1 %787 }
 0x37d   :  { %2303 = vrcp.f32 %v788_v52 }
 0x37e   :  { %949 = vperm.xlu0 %2264, %v887_v57  }
 0x382   :  { %954 = vperm.xlu0 %2264, %v888_v32  }
 0x386   :  { %959 = vperm.xlu0 %2264, %v889_v56  }
 0x387   :  { %v2304_v1 = vpop.eup %2303 }
 0x388   :  { %v799_v62 = vrot.slane %v2304_v1, %v2438_v22  ;;  %v803_v7 = vrot.slane %v2304_v1, %v2664_v12  ;;  %v807_v31 = vrot.slane %v2304_v1, %v2667_v14  ;;  %v811_v22 = vrot.slane %v2304_v1, %v2678_v27 }
 0x389   :  { %v891_v12 = vmul.f32 %v2752_v15, %v859_v36  ;;  %v819_v54 = vrot.slane %v2304_v1, %v2673_v20  ;;  %v823_v23 = vrot.slane %v2304_v1, %v2689_v44  ;;  %v827_v15 = vrot.slane %v2304_v1, %v2697_v59 }
 0x38a   :  { %v876_v8 = vmul.f32 %v2736_v6, %v799_v62  ;;  %v877_v51 = vmul.f32 %v2745_v2, %v803_v7  ;;  %v878_v41 = vmul.f32 %v2754_v16, %v807_v31  ;;  %v879_v6 = vmul.f32 %v2759_v9, %v811_v22 }
 0x38b   :  { %v815_v2 = vrot.slane %v2304_v1, %v2670_v19  ;;  %v881_v16 = vmul.f32 %v2765_v11, %v819_v54  ;;  %v882_v27 = vmul.f32 %v2768_v4, %v823_v23  ;;  %v883_v9 = vmul.f32 %v2771_v47, %v827_v15 }
 0x38c   :  { %894 = vperm.xlu0 %2264, %v876_v8   ;;  %899 = vperm.xlu1 %2263, %v877_v51  }
 0x38d   :  { %v880_v14 = vmul.f32 %v2762_v40, %v815_v2 }
 0x390   :  { %964 = vperm.xlu0 %2264, %v890_v33   ;;  %904 = vperm.xlu1 %2263, %v878_v41  }
 0x394   :  { %969 = vperm.xlu0 %2264, %v891_v12   ;;  %909 = vperm.xlu1 %2263, %v879_v6  }
 0x398   :  { %914 = vperm.xlu1 %2263, %v880_v14  }
 0x39c   :  { %919 = vperm.xlu1 %2263, %v881_v16  }
 0x3a0   :  { %924 = vperm.xlu1 %2263, %v882_v27  }
 0x3a4   :  { %929 = vperm.xlu1 %2263, %v883_v9  }
 0x3f5   :  { %v940_v19 = vpop.permute.xlu0 %939  ;;  %v935_v30 = vpop.permute.xlu1 %934 }
 0x3f6   :  { %v981_v40 = vmul.f32 %v940_v19, %v2461_v38  ;;  %v980_v20 = vmul.f32 %v935_v30, %v2445_v28 }
 0x3f8   :  { %v1051_v29 = vsel %vm351_vm1, %v981_v40, 0.0  ;;  %v1044_v11 = vsel %vm351_vm1, %v980_v20, 0.0 }
 0x3f9   :  { %v945_v44 = vpop.permute.xlu0 %944  ;;  %v1052_v4 = vrot.slane %v1051_v29, 4  ;;  %v1045_v58 = vrot.slane %v1044_v11, 4 }
 0x3fa   :  { %v982_v25 = vmul.f32 %v945_v44, %v2483_v53 }
 0x3fb   :  { %v1053_v42 = vadd.f32 %v1052_v4, %v1051_v29  ;;  %v1046_v37 = vadd.f32 %v1045_v58, %v1044_v11 }
 0x3fc   :  { %v1058_v59 = vsel %vm351_vm1, %v982_v25, 0.0 }
 0x3fd   :  { %v1059_v21 = vrot.slane %v1058_v59, 4  ;;  %v950_v47 = vpop.permute.xlu0 %949  ;;  %v1054_v49 = vrot.slane %v1053_v42, 2  ;;  %v1047_v50 = vrot.slane %v1046_v37, 2 }
 0x3fe   :  { %v983_v60 = vmul.f32 %v950_v47, %v2516_v10 }
 0x3ff   :  { %v1060_v28 = vadd.f32 %v1059_v21, %v1058_v59  ;;  %v1055_v56 = vadd.f32 %v1054_v49, %v1053_v42  ;;  %v1048_v10 = vadd.f32 %v1047_v50, %v1046_v37 }
 0x400   :  { %v1065_v38 = vsel %vm351_vm1, %v983_v60, 0.0 }
 0x401   :  { %v955_v45 = vpop.permute.xlu0 %954  ;;  %v1066_v52 = vrot.slane %v1065_v38, 4  ;;  %v1061_v57 = vrot.slane %v1060_v28, 2  ;;  %v1056_v41 = vrot.slane %v1055_v56, 1  ;;  %v1049_v36 = vrot.slane %v1048_v10, 1 }
 0x402   :  { %v984_v5 = vmul.f32 %v955_v45, %v2500_v0 }
 0x403   :  { %v1067_v1 = vadd.f32 %v1066_v52, %v1065_v38  ;;  %v1062_v8 = vadd.f32 %v1061_v57, %v1060_v28  ;;  %v1057_v9 = vadd.f32 %v1056_v41, %v1055_v56 }
 0x404   :  { %v1072_v53 = vsel %vm351_vm1, %v984_v5, 0.0 }
 0x405   :  { %v1073_v63 = vrot.slane %v1072_v53, 4  ;;  %v960_v32 = vpop.permute.xlu0 %959  ;;  %v1068_v22 = vrot.slane %v1067_v1, 2  ;;  %v1063_v14 = vrot.slane %v1062_v8, 1 }
 0x406   :  { %v985_v24 = vmul.f32 %v960_v32, %v2533_v18 }
 0x407   :  { %v1074_v62 = vadd.f32 %v1073_v63, %v1072_v53  ;;  %v1069_v19 = vadd.f32 %v1068_v22, %v1067_v1  ;;  %v1064_v29 = vadd.f32 %v1063_v14, %v1062_v8 }
 0x408   :  { %v1079_v7 = vsel %vm351_vm1, %v985_v24, 0.0 }
 0x409   :  { %v1080_v51 = vrot.slane %v1079_v7, 4  ;;  %v1075_v6 = vrot.slane %v1074_v62, 2  ;;  %v1070_v47 = vrot.slane %v1069_v19, 1 }
 0x40b   :  { %v895_v61 = vpop.permute.xlu0 %894  ;;  %v900_v0 = vpop.permute.xlu1 %899  ;;  %v1081_v12 = vadd.f32 %v1080_v51, %v1079_v7  ;;  %v1076_v40 = vadd.f32 %v1075_v6, %v1074_v62  ;;  %v1071_v24 = vadd.f32 %v1070_v47, %v1069_v19  ;;  %v1393_v62 = vld [vmem:[%s3113_s6 + $0x40] sm:$0xff]  ;;  %v1394_v7 = vld [vmem:[%s3113_s6 + $0x48] sm:$0xff]  ;;  %v1395_v6 = vld [vmem:[%s3113_s6 + $0x50] sm:$0xff] }
 0x40c   :  { %v972_v31 = vmul.f32 %v895_v61, %v2454_v34  ;;  %v973_v33 = vmul.f32 %v900_v0, %v2469_v43  ;;  %v1050_v43 = vadd.f32 %v1049_v36, %v1048_v10 }
 0x40d   :  { %v1082_v23 = vrot.slane %v1081_v12, 2  ;;  %v1077_v37 = vrot.slane %v1076_v40, 1 }
 0x40e   :  { %v988_v18 = vsel %vm351_vm1, %v972_v31, 0.0  ;;  %v995_v2 = vsel %vm351_vm1, %v973_v33, 0.0  ;;  %v1185_v31 = vld [vmem:[%s3111_s4 + $0x58] sm:$0xff] }
 0x40f   :  { %v965_v54 = vpop.permute.xlu0 %964  ;;  %v905_v16 = vpop.permute.xlu1 %904  ;;  %v989_v27 = vrot.slane %v988_v18, 4  ;;  %v996_v30 = vrot.slane %v995_v2, 4  ;;  %v1083_v58 = vadd.f32 %v1082_v23, %v1081_v12  ;;  %v1078_v8 = vadd.f32 %v1077_v37, %v1076_v40 }
 0x410   :  { %v986_v15 = vmul.f32 %v965_v54, %v2549_v35  ;;  %v974_v34 = vmul.f32 %v905_v16, %v2489_v55  ;;  %v1125_v55 = vsel %vm482_vm2, %v1057_v9, %v1050_v43  ;;  %v2178_v16 = vpack.c.bf16 %v1394_v7, %v1393_v62 }
 0x411   :  { %v990_v59 = vadd.f32 %v989_v27, %v988_v18  ;;  %v997_v60 = vadd.f32 %v996_v30, %v995_v2  ;;  %v1126_v5 = vsel %vm484_vm3, %v1064_v29, %v1125_v55  ;;  %v1084_v53 = vrot.slane %v1083_v58, 1  ;;  %v1396_v18 = vld [vmem:[%s3113_s6 + $0x58] sm:$0xff] }
 0x412   :  { %v1086_v20 = vsel %vm351_vm1, %v986_v15, 0.0  ;;  %v1002_v44 = vsel %vm351_vm1, %v974_v34, 0.0  ;;  %2179 = vmatprep.subr.bf16.mxu0 %v2178_v16  ;;  %v2182_v30 = vpack.c.bf16 %v1396_v18, %v1395_v6 }
 0x413   :  { %v1087_v11 = vrot.slane %v1086_v20, 4  ;;  %v970_v25 = vpop.permute.xlu0 %969  ;;  %v910_v4 = vpop.permute.xlu1 %909  ;;  %v1003_v38 = vrot.slane %v1002_v44, 4  ;;  %v991_v57 = vrot.slane %v990_v59, 2  ;;  %v998_v56 = vrot.slane %v997_v60, 2  ;;  %2181 = vmatpush3.bf16.msra.mxu0 %v2178_v16 }
 0x414   :  { %v987_v21 = vmul.f32 %v970_v25, %v2565_v46  ;;  %v975_v35 = vmul.f32 %v910_v4, %v2523_v13  ;;  %v1182_v13 = vld [vmem:[%s3111_s4 + $0x40] sm:$0xff]  ;;  %v1183_v46 = vld [vmem:[%s3111_s4 + $0x48] sm:$0xff]  ;;  %v1085_v2 = vadd.f32 %v1084_v53, %v1083_v58  ;;  %2183 = vmatprep.subr.bf16.mxu0 %v2182_v30 }
 0x415   :  { %v1088_v42 = vadd.f32 %v1087_v11, %v1086_v20  ;;  %v1004_v51 = vadd.f32 %v1003_v38, %v1002_v44  ;;  %v2146_v0 = vpack.c.bf16 %v1183_v46, %v1182_v13  ;;  %v992_v14 = vadd.f32 %v991_v57, %v990_v59 }
 0x416   :  { %v1093_v28 = vsel %vm351_vm1, %v987_v21, 0.0  ;;  %v1009_v45 = vsel %vm351_vm1, %v975_v35, 0.0  ;;  %v999_v23 = vadd.f32 %v998_v56, %v997_v60  ;;  %v1127_v44 = vsel %vm486_vm4, %v1071_v24, %v1126_v5  ;;  %v1187_v24 = vld [vmem:[%s3111_s4 + $0x68] sm:$0xff]  ;;  %v1397_v56 = vld [vmem:[%s3113_s6 + $0x60] sm:$0xff] }
 0x417   :  { %v1089_v49 = vrot.slane %v1088_v42, 2  ;;  %v1094_v50 = vrot.slane %v1093_v28, 4  ;;  %v915_v52 = vpop.permute.xlu1 %914  ;;  %v1010_v63 = vrot.slane %v1009_v45, 4  ;;  %2147 = vmatprep.subr.bf16.mxu1 %v2146_v0  ;;  %v1005_v43 = vrot.slane %v1004_v51, 2  ;;  %2185 = vmatpush3.bf16.msra.mxu0 %v2182_v30  ;;  %v1173_v30 = vld [vmem:[%s3111_s4 + $0x8] sm:$0xff] }
 0x418   :  { %v976_v32 = vmul.f32 %v915_v52, %v2505_v3  ;;  %v1184_v3 = vld [vmem:[%s3111_s4 + $0x50] sm:$0xff]  ;;  %2149 = vmatpush3.bf16.msra.mxu1 %v2146_v0  ;;  %v1128_v4 = vsel %vm488_vm5, %v1078_v8, %v1127_v44  ;;  %v993_v58 = vrot.slane %v992_v14, 1  ;;  %v1000_v55 = vrot.slane %v999_v23, 1  ;;  %v1398_v8 = vld [vmem:[%s3113_s6 + $0x68] sm:$0xff] }
 0x419   :  { %v1090_v10 = vadd.f32 %v1089_v49, %v1088_v42  ;;  %v1095_v1 = vadd.f32 %v1094_v50, %v1093_v28  ;;  %v1011_v36 = vadd.f32 %v1010_v63, %v1009_v45  ;;  %v2150_v34 = vpack.c.bf16 %v1185_v31, %v1184_v3 }
 0x41a   :  { %v1016_v61 = vsel %vm351_vm1, %v976_v32, 0.0  ;;  %v1129_v35 = vsel %vm490_vm6, %v1085_v2, %v1128_v4  ;;  %v1006_v47 = vadd.f32 %v1005_v43, %v1004_v51  ;;  %v2338_v13 = vmov 0.0   ;;  %v1188_v51 = vld [vmem:[%s3111_s4 + $0x70] sm:$0xff] }
 0x41b   :  { %v1091_v33 = vrot.slane %v1090_v10, 1  ;;  %v1096_v41 = vrot.slane %v1095_v1, 2  ;;  %v1017_v22 = vrot.slane %v1016_v61, 4  ;;  %v920_v12 = vpop.permute.xlu1 %919  ;;  %v1012_v20 = vrot.slane %v1011_v36, 2  ;;  %2151 = vmatprep.subr.bf16.mxu1 %v2150_v34  ;;  %1142 = vst.msk [vmem:[#allocation2 + $0x10] sm:$0xff] %vm1141_vm10, %v2338_v13 }
 0x41c   :  { %v977_v54 = vmul.f32 %v920_v12, %v2539_v26  ;;  %2153 = vmatpush3.bf16.msra.mxu1 %v2150_v34  ;;  %v1007_v46 = vrot.slane %v1006_v47, 1 }
 0x41d   :  { %v1097_v27 = vadd.f32 %v1096_v41, %v1095_v1  ;;  %v1018_v15 = vadd.f32 %v1017_v22, %v1016_v61  ;;  %v1092_v9 = vadd.f32 %v1091_v33, %v1090_v10  ;;  %v1013_v37 = vadd.f32 %v1012_v20, %v1011_v36  ;;  %v1189_v61 = vld [vmem:[%s3111_s4 + $0x78] sm:$0xff]  ;;  %v1399_v41 = vld [vmem:[%s3113_s6 + $0x70] sm:$0xff] }
 0x41e   :  { %v1023_v19 = vsel %vm351_vm1, %v977_v54, 0.0  ;;  %v994_v10 = vadd.f32 %v993_v58, %v992_v14  ;;  %v1001_v1 = vadd.f32 %v1000_v55, %v999_v23  ;;  %v2186_v33 = vpack.c.bf16 %v1398_v8, %v1397_v56  ;;  %v1400_v36 = vld [vmem:[%s3113_s6 + $0x78] sm:$0xff]  ;;  %v1553_v56 = vld [vmem:[%s3113_s6 + $0x80] sm:$0xff] }
 0x41f   :  { %v1098_v40 = vrot.slane %v1097_v27, 1  ;;  %v1024_v29 = vrot.slane %v1023_v19, 4  ;;  %v925_v11 = vpop.permute.xlu1 %924  ;;  %v1019_v26 = vrot.slane %v1018_v15, 2  ;;  %v1130_v42 = vsel %vm492_vm7, %v1092_v9, %v1129_v35  ;;  %v1174_v35 = vld [vmem:[%s3111_s4 + $0x10] sm:$0xff]  ;;  %v1175_v55 = vld [vmem:[%s3111_s4 + $0x18] sm:$0xff] }
 0x420   :  { %v978_v25 = vmul.f32 %v925_v11, %v2555_v39  ;;  %v1014_v57 = vrot.slane %v1013_v37, 1  ;;  %v1008_v22 = vadd.f32 %v1007_v46, %v1006_v47  ;;  %v2158_v12 = vpack.c.bf16 %v1189_v61, %v1188_v51  ;;  %2187 = vmatprep.subr.bf16.mxu0 %v2186_v33  ;;  %v1386_v11 = vld [vmem:[%s3113_s6 + $0x8] sm:$0xff]  ;;  %v1387_v47 = vld [vmem:[%s3113_s6 + $0x10] sm:$0xff]  ;;  %v1557_v61 = vld [vmem:[%s3113_s6 + $0xa0] sm:$0xff] }
 0x421   :  { %v1025_v59 = vadd.f32 %v1024_v29, %v1023_v19  ;;  %v1099_v21 = vadd.f32 %v1098_v40, %v1097_v27  ;;  %v1020_v5 = vadd.f32 %v1019_v26, %v1018_v15  ;;  %v2190_v6 = vpack.c.bf16 %v1400_v36, %v1399_v41  ;;  %2189 = vmatpush3.bf16.msra.mxu0 %v2186_v33  ;;  %v1172_v19 = vld [vmem:[%s3111_s4] sm:$0xff]  ;;  %v1559_v33 = vld [vmem:[%s3113_s6 + $0xb0] sm:$0xff]  ;;  %v1560_v41 = vld [vmem:[%s3113_s6 + $0xb8] sm:$0xff] }
 0x422   :  { %v1030_v60 = vsel %vm351_vm1, %v978_v25, 0.0  ;;  %v1015_v18 = vadd.f32 %v1014_v57, %v1013_v37  ;;  %v1118_v16 = vsel %vm482_vm2, %v1001_v1, %v994_v10  ;;  %v1385_v40 = vld [vmem:[%s3113_s6] sm:$0xff]  ;;  %v2162_v29 = vpack.c.bf16 %v1173_v30, %v1172_v19  ;;  %v1179_v57 = vld [vmem:[%s3111_s4 + $0x38] sm:$0xff]  ;;  %v1554_v10 = vld [vmem:[%s3113_s6 + $0x88] sm:$0xff] }
 0x423   :  { %v1026_v38 = vrot.slane %v1025_v59, 2  ;;  %v1031_v28 = vrot.slane %v1030_v60, 4  ;;  %v930_v45 = vpop.permute.xlu1 %929  ;;  %v1131_v39 = vsel %vm494_vm8, %v1099_v21, %v1130_v42  ;;  %v1021_v62 = vrot.slane %v1020_v5, 1  ;;  %2191 = vmatprep.subr.bf16.mxu0 %v2190_v6  ;;  %v1176_v37 = vld [vmem:[%s3111_s4 + $0x20] sm:$0xff] }
 0x424   :  { %v979_v49 = vmul.f32 %v930_v45, %v2571_v48  ;;  %1134 = vrot.lane.b32.xlu0 %v1131_v39, %s2337_s19  ;;  %v1186_v48 = vld [vmem:[%s3111_s4 + $0x60] sm:$0xff]  ;;  %v1119_v15 = vsel %vm484_vm3, %v1008_v22, %v1118_v16  ;;  %v2194_v25 = vpack.c.bf16 %v1386_v11, %v1385_v40  ;;  %v2166_v45 = vpack.c.bf16 %v1175_v55, %v1174_v35 }
 0x425   :  { %v1027_v50 = vadd.f32 %v1026_v38, %v1025_v59  ;;  %v1032_v52 = vadd.f32 %v1031_v28, %v1030_v60  ;;  %v2154_v7 = vpack.c.bf16 %v1187_v24, %v1186_v48  ;;  %v1022_v54 = vadd.f32 %v1021_v62, %v1020_v5  ;;  %2193 = vmatpush3.bf16.msra.mxu0 %v2190_v6  ;;  %v1388_v60 = vld [vmem:[%s3113_s6 + $0x18] sm:$0xff]  ;;  %v1177_v38 = vld [vmem:[%s3111_s4 + $0x28] sm:$0xff]  ;;  %v1389_v5 = vld [vmem:[%s3113_s6 + $0x20] sm:$0xff] }
 0x426   :  { %v1037_v53 = vsel %vm351_vm1, %v979_v49, 0.0  ;;  %v1120_v43 = vsel %vm486_vm4, %v1015_v18, %v1119_v15  ;;  %2195 = vmatprep.subr.bf16.mxu0 %v2194_v25  ;;  %v2198_v39 = vpack.c.bf16 %v1388_v60, %v1387_v47  ;;  %v1390_v49 = vld [vmem:[%s3113_s6 + $0x28] sm:$0xff]  ;;  %v2210_v1 = vpack.c.bf16 %v1554_v10, %v1553_v56  ;;  %v1555_v62 = vld [vmem:[%s3113_s6 + $0x90] sm:$0xff]  ;;  %v1909_v16 = vld [vmem:[%s3112_s5] ss:$0 sm:$0xff] }
 0x427   :  { %v1033_v63 = vrot.slane %v1032_v52, 2  ;;  %v1038_v32 = vrot.slane %v1037_v53, 4  ;;  %v1028_v0 = vrot.slane %v1027_v50, 1  ;;  %2155 = vmatprep.subr.bf16.mxu1 %v2154_v7  ;;  %v1121_v20 = vsel %vm488_vm5, %v1022_v54, %v1120_v43  ;;  %v1690_v6 = vld [vmem:[%s3115_s8 + $0x8] sm:$0x3] }
 0x428   :  { %2157 = vmatpush3.bf16.msra.mxu1 %v2154_v7  ;;  %v2202_v46 = vpack.c.bf16 %v1390_v49, %v1389_v5  ;;  %v1556_v7 = vld [vmem:[%s3113_s6 + $0x98] sm:$0xff]  ;;  %v2222_v36 = vpack.c.bf16 %v1560_v41, %v1559_v33  ;;  %v2339_v18 = vmov 0.0|0.0   ;;  %vm1663_vm3 = vcmask 48128  }
 0x429   :  { %v1034_v3 = vadd.f32 %v1033_v63, %v1032_v52  ;;  %v1039_v31 = vadd.f32 %v1038_v32, %v1037_v53  ;;  %2159 = vmatprep.subr.bf16.mxu1 %v2158_v12  ;;  %v1029_v23 = vadd.f32 %v1028_v0, %v1027_v50  ;;  %v2170_v52 = vpack.c.bf16 %v1177_v38, %v1176_v37  ;;  %v1178_v53 = vld [vmem:[%s3111_s4 + $0x30] sm:$0xff]  ;;  %v1392_v32 = vld [vmem:[%s3113_s6 + $0x38] sm:$0xff]  ;;  %v1558_v0 = vld [vmem:[%s3113_s6 + $0xa8] sm:$0xff] }
 0x42a   :  { %v1391_v63 = vld [vmem:[%s3113_s6 + $0x30] sm:$0xff]  ;;  %v2174_v48 = vpack.c.bf16 %v1179_v57, %v1178_v53  ;;  %v2214_v8 = vpack.c.bf16 %v1556_v7, %v1555_v62  ;;  %vm2341_vm5 = vmmov 0  }
 0x42b   :  { %v1035_v2 = vrot.slane %v1034_v3, 1  ;;  %v1040_v14 = vrot.slane %v1039_v31, 2  ;;  %v1122_v26 = vsel %vm490_vm6, %v1029_v23, %v1121_v20  ;;  %v2206_v24 = vpack.c.bf16 %v1392_v32, %v1391_v63  ;;  %v1777_v32 = vld [vmem:[%s3117_s10] sm:$0xff] }
 0x42c   :  { %2161 = vmatpush3.bf16.msra.mxu1 %v2158_v12  ;;  %v1689_v12 = vld [vmem:[%s3115_s8] sm:$0xff]  ;;  %v1150_v23 = vand.u32 7, %v2431_v17  ;;  %vm1698_vm6 = vcmask 80896  }
 0x42d   :  { %v1041_v27 = vadd.f32 %v1040_v14, %v1039_v31  ;;  %v1036_v34 = vadd.f32 %v1035_v2, %v1034_v3  ;;  %2163 = vmatprep.subr.bf16.mxu1 %v2162_v29  ;;  %v2218_v31 = vpack.c.bf16 %v1558_v0, %v1557_v61  ;;  %v2227_v2 = vpack.c.bf16 %v1690_v6, %v1689_v12  ;;  %v1781_v61 = vld [vmem:[%s3117_s10 + $0x20] sm:$0xff]  ;;  %v1782_v0 = vld [vmem:[%s3117_s10 + $0x28] sm:$0xff] }
 0x42e   :  { %v1145_v14 = vadd.s32 8, %v2431_v17  ;;  %vm1363_vm0 = vcmp.le.s32.totalorder %v1150_v23, 6  ;;  %vm1655_vm4 = vcmp.le.s32.totalorder %v1150_v23, 5  ;;  %v2237_v41 = vpack.c.bf16 %v1782_v0, %v1781_v61 }
 0x42f   :  { %v1042_v9 = vrot.slane %v1041_v27, 1  ;;  %v1123_v4 = vsel %vm492_vm7, %v1036_v34, %v1122_v26  ;;  %vm1797_vm7 = vcmask 818176  }
 0x430   :  { %v1157_v54 = vand.u32 7, %v1145_v14  ;;  %v1783_v14 = vld [vmem:[%s3117_s10 + $0x30] sm:$0xff] }
 0x431   :  { %v1043_v44 = vadd.f32 %v1042_v9, %v1041_v27 }
 0x432   :  { %vm1364_vm15 = vcmp.le.s32.totalorder %v1157_v54, 6  ;;  %vm1656_vm1 = vcmp.le.s32.totalorder %v1157_v54, 5  ;;  %v1784_v54 = vld [vmem:[%s3117_s10 + $0x38] sm:$0xff] }
 0x433   :  { %v1124_v58 = vsel %vm494_vm8, %v1043_v44, %v1123_v4  ;;  %v2240_v23 = vpack.c.bf16 %v1784_v54, %v1783_v14  ;;  %vm1875_vm8 = vcmask 17408  }
 0x434   :  { %1132 = vrot.lane.b32.xlu1 %v1124_v58, %s2337_s19 }
 0x496   :  { %v1135_v59 = vpop.permute.xlu0 %1134 }
 0x497   :  { %1140 = vst.msk [vmem:[#allocation2 + $0x8] sm:$0xff] %vm1138_vm11, %v1135_v59 }
 0x49e   :  { %v1181_v28 = vld [vmem:[#allocation2 + $0x9] sm:$0xff] }
 0x49f   :  { %v1171_v51 = vld [vmem:[#allocation2 + $0x8] sm:$0xff] }
 0x4a0   :  { %v1552_v22 = vld [vmem:[#allocation2 + $0xa] sm:$0xff] }
 0x4a6   :  { %v1133_v21 = vpop.permute.xlu1 %1132 }
 0x4a7   :  { %1139 = vst.msk [vmem:[#allocation2] sm:$0xff] %vm1138_vm11, %v1133_v21  ;;  %v1916_v21 = vld [vmem:[%s3114_s7] ss:$0 sm:$0xff] }
 0x4ae   :  { %v1180_v42 = vld [vmem:[#allocation2 + $0x1] sm:$0xff] }
 0x4af   :  { %2023 = vmatprep.mubr.msk.f32.mxu1 %vm1141_vm10, %v1180_v42  ;;  %2061 = vmatprep.mubr.msk.f32.mxu0 %vm1141_vm10, %v1180_v42  ;;  %v1170_v50 = vld [vmem:[#allocation2] sm:$0xff] }
 0x4b0   :  { %2024 = vmatmul.mubr.msk.f32.vlgmr.msra.gmra.mrb[0].mxu1 %vm1141_vm10, %v1181_v28  ;;  %2062 = vmatmul.mubr.msk.f32.vlgmr.msra.gmra.mrb[2].mxu0 %vm1141_vm10, %v1181_v28  ;;  %v1551_v3 = vld [vmem:[#allocation2 + $0x2] sm:$0xff] }
 0x4b1   :  { %2165 = vmatpush3.bf16.msra.mxu1 %v2162_v29  ;;  %2197 = vmatpush3.bf16.msra.mxu0 %v2194_v25 }
 0x4b2   :  { %2042 = vmatprep.mubr.msk.f32.mxu1 %vm1141_vm10, %v1170_v50  ;;  %2080 = vmatprep.mubr.msk.f32.mxu0 %vm1141_vm10, %v1170_v50 }
 0x4b3   :  { %2167 = vmatprep.subr.bf16.mxu1 %v2166_v45  ;;  %2199 = vmatprep.subr.bf16.mxu0 %v2198_v39 }
 0x4b5   :  { %2169 = vmatpush3.bf16.msra.mxu1 %v2166_v45  ;;  %2201 = vmatpush3.bf16.msra.mxu0 %v2198_v39 }
 0x4b6   :  { %2171 = vmatprep.subr.bf16.mxu1 %v2170_v52  ;;  %2203 = vmatprep.subr.bf16.mxu0 %v2202_v46 }
 0x4b9   :  { %2173 = vmatpush3.bf16.msra.mxu1 %v2170_v52  ;;  %2205 = vmatpush3.bf16.msra.mxu0 %v2202_v46 }
 0x4ba   :  { %2175 = vmatprep.subr.bf16.mxu1 %v2174_v48  ;;  %2207 = vmatprep.subr.bf16.mxu0 %v2206_v24 }
 0x4bd   :  { %2177 = vmatpush3.bf16.msra.mxu1 %v2174_v48  ;;  %2209 = vmatpush3.bf16.msra.mxu0 %v2206_v24  ;;  %v1778_v48 = vld [vmem:[%s3117_s10 + $0x8] sm:$0xff]  ;;  %v1779_v24 = vld [vmem:[%s3117_s10 + $0x10] sm:$0xff] }
 0x4be   :  { %2211 = vmatprep.subr.bf16.mxu0 %v2210_v1  ;;  %2230 = vmatprep.subr.bf16.mxu1 %v2339_v18  ;;  %v2231_v10 = vpack.c.bf16 %v1778_v48, %v1777_v32 }
 0x4c0   :  { %2043 = vmatmul.mubr.msk.f32.vlgmr.msra.gmra.mrb[0].mxu1 %vm1141_vm10, %v1171_v51  ;;  %2081 = vmatmul.mubr.msk.f32.vlgmr.msra.gmra.mrb[2].mxu0 %vm1141_vm10, %v1171_v51 }
 0x4c1   :  { %2213 = vmatpush3.bf16.msra.mxu0 %v2210_v1  ;;  %2099 = vmatprep.mubr.msk.f32.mxu0 %vm1141_vm10, %v1551_v3  ;;  %v1780_v1 = vld [vmem:[%s3117_s10 + $0x18] sm:$0xff] }
 0x4c2   :  { %2215 = vmatprep.subr.bf16.mxu0 %v2214_v8  ;;  %2135 = vmatprep.mubr.msk.f32.mxu1 %vm2341_vm5, %v2338_v13 }
 0x4c3   :  { %2232 = vmatpush3.bf16.msra.mxu1 %v2231_v10 }
 0x4c4   :  { %2233 = vmatprep.subr.bf16.mxu1 %v2339_v18 }
 0x4c5   :  { %2217 = vmatpush3.bf16.msra.mxu0 %v2214_v8  ;;  %v2234_v8 = vpack.c.bf16 %v1780_v1, %v1779_v24 }
 0x4c6   :  { %2219 = vmatprep.subr.bf16.mxu0 %v2218_v31 }
 0x4c7   :  { %2235 = vmatpush3.bf16.msra.mxu1 %v2234_v8 }
 0x4c8   :  { %2236 = vmatprep.subr.bf16.mxu1 %v2339_v18 }
 0x4c9   :  { %2221 = vmatpush3.bf16.msra.mxu0 %v2218_v31 }
 0x4ca   :  { %2223 = vmatprep.subr.bf16.mxu0 %v2222_v36 }
 0x4cb   :  { %2238 = vmatpush3.bf16.msra.mxu1 %v2237_v41 }
 0x4cc   :  { %2239 = vmatprep.subr.bf16.mxu1 %v2339_v18 }
 0x4cd   :  { %2225 = vmatpush3.bf16.msra.mxu0 %v2222_v36 }
 0x4ce   :  { %2226 = vmatprep.subr.bf16.mxu0 %v2339_v18 }
 0x4cf   :  { %2241 = vmatpush3.bf16.msra.mxu1 %v2240_v23 }
 0x4d0   :  { %2100 = vmatmul.mubr.msk.f32.vlgmr.msra.gmra.mrb[2].mxu0 %vm1141_vm10, %v1552_v22  ;;  %2242 = vmatprep.subr.bf16.mxu1 %v2339_v18 }
 0x4d1   :  { %2229 = vmatpush3.bf16.msk.msra.mxu0 %vm2228_vm14, %v2227_v2  ;;  %2106 = vmatprep.mubr.msk.f32.mxu0 %vm2341_vm5, %v2338_v13 }
 0x593   :  { %v2044_v27 = vpop.f32.mrb[0].mxu1 }
 0x594   :  { %v1360_v15 = vadd.f32 %v2044_v27, %v1909_v16  ;;  %v1343_v34 = vpop.f32.mrb[1].mxu1  ;;  %v1786_v27 = vld [vmem:[%s3117_s10 + $0x48] sm:$0xff] }
 0x595   :  { %v1359_v9 = vadd.f32 %v1909_v16, %v1343_v34  ;;  %v1785_v16 = vld [vmem:[%s3117_s10 + $0x40] sm:$0xff]  ;;  %v1787_v34 = vld [vmem:[%s3117_s10 + $0x50] sm:$0xff] }
 0x596   :  { %v1362_v43 = vmax.f32 %v1360_v15, 0.0  ;;  %v2243_v15 = vpack.c.bf16 %v1786_v27, %v1785_v16 }
 0x597   :  { %v1361_v19 = vmax.f32 %v1359_v9, 0.0  ;;  %v1788_v9 = vld [vmem:[%s3117_s10 + $0x58] sm:$0xff] }
 0x598   :  { %v1370_v30 = vsel %vm1364_vm15, %v1362_v43, 0.0  ;;  %2244 = vmatpush3.bf16.msra.mxu1 %v2243_v15  ;;  %v2246_v43 = vpack.c.bf16 %v1788_v9, %v1787_v34 }
 0x599   :  { %v1378_v40 = vsel %vm505_vm9, %v1370_v30, -inf  ;;  %v1369_v20 = vsel %vm1363_vm0, %v1361_v19, 0.0  ;;  %2245 = vmatprep.subr.bf16.mxu1 %v2339_v18  ;;  %v1789_v19 = vld [vmem:[%s3117_s10 + $0x60] sm:$0xf] }
 0x59a   :  { %v1379_v29 = vrot.slane %v1378_v40, 4  ;;  %v1371_v11 = vsel %vm505_vm9, %v1369_v20, -inf  ;;  %v1917_v30 = vld [vmem:[%s3116_s9] ss:$0 sm:$0xff]  ;;  %s2343_s9 = smov [#allocation3]  }
 0x59b   :  { %v1372_v44 = vrot.slane %v1371_v11, 4  ;;  %s1894_s10 = sshll.u32 %s2343_s9, 4  ;;  %s1895_s10 = int_to_ptr.vmem [resolvable:$true] %s1894_s10 }
 0x59c   :  { %v1380_v26 = vmax.f32 %v1378_v40, %v1379_v29  ;;  %2247 = vmatpush3.bf16.msra.mxu1 %v2246_v43  ;;  %p2316_p1 = scmp.lt.s32.totalorder %s1895_s10, %s1895_s10 }
 0x59d   :  { %v1373_v25 = vmax.f32 %v1371_v11, %v1372_v44  ;;  %2133 = vmatprep.subr.mxu1 %v2338_v13  ;;  %v1920_v13 = vld [vmem:[%s3118_s11] ss:$0 sm:$0xff]  ;;  %s2311_s11 = scalar_lea.vmem %s1895_s10, 32 }
 0x59e   :  { %v1381_v4 = vrot.slane %v1380_v26, 2  ;;  %p2312_p0 = scmp.ne.s32.totalorder %s1895_s10, %s2311_s11  ;;  %p2317_p2 = scmp.lt.s32.totalorder %s2311_s11, %s2311_s11 }
 0x59f   :  { %v1374_v17 = vrot.slane %v1373_v25, 2 }
 0x5a0   :  { %v1382_v58 = vmax.f32 %v1380_v26, %v1381_v4  ;;  %p2318_p3 = por %p2317_p2, %p2316_p1 }
 0x5a1   :  { %v1375_v59 = vmax.f32 %v1373_v25, %v1374_v17 }
 0x5a2   :  { %v1383_v35 = vrot.slane %v1382_v58, 1  ;;  %p2319_p4 = pnand %p2318_p3, %p2312_p0 }
 0x5a3   :  { %v1376_v55 = vrot.slane %v1375_v59, 1  ;;  %v2101_v47 = vpop.f32.mrb[2].mxu0 }
 0x5a4   :  { %v1652_v60 = vadd.f32 %v2101_v47, %v1916_v21  ;;  %v1633_v42 = vpop.f32.mrb[3].mxu0  ;;  %v1384_v37 = vmax.f32 %v1382_v58, %v1383_v35 }
 0x5a5   :  { %v1651_v38 = vadd.f32 %v1916_v21, %v1633_v42  ;;  %v1377_v28 = vmax.f32 %v1375_v59, %v1376_v55 }
 0x5a6   :  { %v1654_v45 = vmax.f32 %v1652_v60, 0.0 }
 0x5a7   :  { %v1653_v39 = vmax.f32 %v1651_v38, 0.0  ;;  %v1680_v5 = vsel %vm482_vm2, %v1384_v37, %v1377_v28 }
 0x5a8   :  { %v1662_v49 = vsel %vm1656_vm1, %v1654_v45, 0.0 }
 0x5a9   :  { %v1671_v50 = vsel %vm1663_vm3, %v1662_v49, -inf  ;;  %v1661_v52 = vsel %vm1655_vm4, %v1653_v39, 0.0 }
 0x5aa   :  { %v1672_v46 = vrot.slane %v1671_v50, 4  ;;  %v1664_v53 = vsel %vm1663_vm3, %v1661_v52, -inf }
 0x5ab   :  { %v1665_v57 = vrot.slane %v1664_v53, 4 }
 0x5ac   :  { %v1673_v63 = vmax.f32 %v1671_v50, %v1672_v46 }
 0x5ad   :  { %v1666_v56 = vmax.f32 %v1664_v53, %v1665_v57 }
 0x5ae   :  { %v1674_v62 = vrot.slane %v1673_v63, 2 }
 0x5af   :  { %v1667_v7 = vrot.slane %v1666_v56, 2 }
 0x5b0   :  { %v1675_v51 = vmax.f32 %v1673_v63, %v1674_v62 }
 0x5b1   :  { %v1668_v3 = vmax.f32 %v1666_v56, %v1667_v7 }
 0x5b2   :  { %v1676_v31 = vrot.slane %v1675_v51, 1 }
 0x5b3   :  { %v1669_v33 = vrot.slane %v1668_v3, 1 }
 0x5b4   :  { %v1677_v36 = vmax.f32 %v1675_v51, %v1676_v31 }
 0x5b5   :  { %v1670_v22 = vmax.f32 %v1668_v3, %v1669_v33 }
 0x5b7   :  { %v1684_v12 = vsel %vm482_vm2, %v1677_v36, %v1670_v22  ;;  %vm1801_vm2 = vcmask 1043456  }
 0x5b8   :  { %1685 = vrot.lane.b32.xlu1 %v1684_v12, %s2342_s13  ;;  %2134 = vmatpush3.msk.msra.mxu1 %vm1801_vm2, %v1789_v19 }
 0x62a   :  { %v1686_v6 = vpop.permute.xlu1 %1685 }
 0x62b   :  { %v1688_v2 = vsel %vm505_vm9, %v1680_v5, %v1686_v6 }
 0x62c   :  { %2107 = vmatmul.mubr.msk.f32.vlgmr.msra.gmra.mrb[4].mxu0 %vm1698_vm6, %v1688_v2 }
 0x6ff   :  { %v1772_v40 = vpop.f32.mrb[4].mxu0 }
 0x700   :  { %v1773_v20 = vadd.f32 %v1917_v30, %v1772_v40  ;;  %v2108_v29 = vpop.f32.mrb[5].mxu0 }
 0x702   :  { %2305 = vtanh.f32 %v1773_v20 }
 0x70c   :  { %v2306_v11 = vpop.eup %2305 }
 0x70d   :  { %2136 = vmatmul.mubr.msk.f32.vlgmr.msra.gmra.mrb[2].mxu1 %vm1797_vm7, %v2306_v11 }
 0x7e0   :  { %v1871_v18 = vpop.f32.mrb[2].mxu1 }
 0x7e1   :  { %v1872_v44 = vadd.f32 %v1920_v13, %v1871_v18  ;;  %v2137_v26 = vpop.f32.mrb[3].mxu1 }
 0x7e3   :  { %v1876_v25 = vsel %vm1875_vm8, %v1872_v44, -inf }
 0x7e4   :  { %1877 = vmax.xlane.f32.xlu0 %v1876_v25 }
 0x871   :  { %v1878_v4 = vpop.xlane.xlu0 %1877 }
 0x872   :  { %v1879_v17 = vsub.f32 %v1872_v44, %v1878_v4 }
 0x874   :  { %v1880_v58 = vmul.f32 1.442695, %v1879_v17 }
 0x876   :  { %2307 = vpow2.f32 %v1880_v58 }
 0x880   :  { %v2308_v59 = vpop.eup %2307 }
 0x881   :  { %v1882_v21 = vsel %vm1875_vm8, %v2308_v59, 0.0 }
 0x882   :  { %1883 = vadd.xlane.f32.xlu1 %v1882_v21 }
 0x90f   :  { %v1884_v35 = vpop.xlane.xlu1 %1883 }
 0x910   :  { %2309 = vrcp.f32 %v1884_v35 }
 0x91a   :  { %v2310_v55 = vpop.eup %2309 }
 0x91b   :  { %v1886_v47 = vmul.f32 %v2310_v55, %v2308_v59 }
 0x91d   :  { %1887 = vst.msk [vmem:[#allocation3] sm:$0x3] %vm1875_vm8, %v1886_v47 }
 0x91e   :  { %2322 = shalt.err (!%p2319_p4)
}
 0x91f   :  { %s2323_s4 = scalar_lea.hbm %s3119_s12, 32 }
 0x920   :  { %p2324_p5 = scmp.ne.s32.totalorder %s3119_s12, %s2323_s4  ;;  %p2327_p6 = scmp.lt.u32.totalorder %s2323_s4, %s3119_s12 }
 0x922   :  { %p2329_p7 = pnand %p2327_p6, %p2324_p5 }
 0x924   :  { %2332 = shalt.err (!%p2329_p7)
}
 0x925   :  { %1897 = dma.vmem_to_hbm [thread:$0]  %s1895_s10, 32, %s3119_s12, [#allocation4]  }
 0x926   :  { %2333 = dma.done.wait [#allocation4], 32  }
 0x927   :  { %2334 = vsyncadd [#allocation4], 4294967264 }
 0x928   :  { %1901 = vsyncpa [#allocation4], 1 }

</bundles_post_ra>
